<compile_context>
chip_gen: v7x
topology: tpu7x:2x2x1
jax: 0.10.0
libtpu: 0.0.40
codegen_flags: <defaults>
</compile_context>

<pallas_src>
import jax
import jax.numpy as jnp
from jax.experimental import pallas as pl
from jax.experimental.pallas import tpu as pltpu


def _self_attn_kernel(x_cn_ref, xt_full_ref, xt_tile_ref,
                      wq_ref, bq_ref, wk_ref, bk_ref,
                      wvt_ref, bv_ref, gamma_ref,
                      out_ref, attn_ref):
    C = x_cn_ref.shape[0]

    x_cn = x_cn_ref[...]          # (C, N)  channels on sublanes, spatial on lanes
    x_nc = xt_full_ref[...]       # (N, C)  full transposed view (for v)
    x_tile = xt_tile_ref[...]     # (TQ, C) rows of this query tile (for q + residual)

    # ---- 1x1-conv projections on the VPU (K = C = 4 -> MXU would be wasted) ----
    # key row, lane-major: (1, N)
    k_row = x_cn[0:1, :] * wk_ref[0:1, 0:1]
    for c in range(1, C):
        k_row = k_row + x_cn[c:c + 1, :] * wk_ref[0:1, c:c + 1]
    k_row = k_row + bk_ref[0:1, 0:1]

    # query column for this row tile: (TQ, 1)
    q_col = x_tile[:, 0:1] * wq_ref[0:1, 0:1]
    for c in range(1, C):
        q_col = q_col + x_tile[:, c:c + 1] * wq_ref[0:1, c:c + 1]
    q_col = q_col + bq_ref[0:1, 0:1]

    # value in (N, C) orientation so the final matmul never transposes attn
    v_t = x_nc[:, 0:1] * wvt_ref[0:1, :]
    for c in range(1, C):
        v_t = v_t + x_nc[:, c:c + 1] * wvt_ref[c:c + 1, :]
    v_t = v_t + bv_ref[...]       # (N, C)

    # ---- rank-1 energy + row-tiled softmax ----
    energy = q_col * k_row                               # (TQ, N) outer product
    k_max = jnp.max(k_row, axis=-1, keepdims=True)       # (1, 1)
    k_min = jnp.min(k_row, axis=-1, keepdims=True)       # (1, 1)
    # exact row max of the rank-1 energy (monotone fp multiply)
    m = jnp.where(q_col >= 0.0, q_col * k_max, q_col * k_min)   # (TQ, 1)
    e = jnp.exp(energy - m)                              # (TQ, N)
    row_sum = jnp.sum(e, axis=-1, keepdims=True)         # (TQ, 1)
    # One reciprocal per row + N multiplies instead of N divides per row.
    # approx=False keeps 1e-5-level agreement with the reference softmax.
    attn = e * pl.reciprocal(row_sum, approx=False)      # (TQ, N)

    attn_ref[...] = attn

    # ---- out rows: (TQ, C) = attn @ v^T on the MXU (big operand untransposed) ----
    out_attn = jnp.dot(attn, v_t, preferred_element_type=jnp.float32)
    out_ref[...] = gamma_ref[0:1, 0:1] * out_attn + x_tile


def _pick_tq(n):
    """Largest query-row tile in {512, 256, 128} that divides N and leaves >=2 tiles."""
    for t in (512, 256, 128):
        if n % t == 0 and n // t >= 2:
            return t
    if n % 128 == 0:
        return 128
    # Odd N: fall back to a single full-extent tile (no padding -> no masking needed).
    return n


def self_attn(x_nchw, wq, bq, wk, bk, wv, bv, gamma):
    B, C, W, H = x_nchw.shape
    N = W * H
    TQ = _pick_tq(N)
    NT = N // TQ

    x = x_nchw.reshape(B, C, N).astype(jnp.float32)      # (B, C, N)
    x_t = jnp.transpose(x, (0, 2, 1))                    # (B, N, C)

    wq2 = wq.reshape(1, C).astype(jnp.float32)
    wk2 = wk.reshape(1, C).astype(jnp.float32)
    bq2 = bq.reshape(1, 1).astype(jnp.float32)
    bk2 = bk.reshape(1, 1).astype(jnp.float32)
    wv_t = jnp.transpose(wv.reshape(C, C).astype(jnp.float32))   # (C_in, C_out)
    bv_row = bv.reshape(1, C).astype(jnp.float32)
    gamma2 = gamma.reshape(1, 1).astype(jnp.float32)

    out_t, attn = pl.pallas_call(
        _self_attn_kernel,
        out_shape=(jax.ShapeDtypeStruct((B, N, C), jnp.float32),
                   jax.ShapeDtypeStruct((B, N, N), jnp.float32)),
        grid=(B, NT),
        in_specs=[
            pl.BlockSpec((None, C, N), lambda b, qi: (b, 0, 0)),     # x   (C, N)
            pl.BlockSpec((None, N, C), lambda b, qi: (b, 0, 0)),     # x^T full (for v)
            pl.BlockSpec((None, TQ, C), lambda b, qi: (b, qi, 0)),   # x^T row tile (q, residual)
            pl.BlockSpec((1, C), lambda b, qi: (0, 0)),              # wq
            pl.BlockSpec((1, 1), lambda b, qi: (0, 0)),              # bq
            pl.BlockSpec((1, C), lambda b, qi: (0, 0)),              # wk
            pl.BlockSpec((1, 1), lambda b, qi: (0, 0)),              # bk
            pl.BlockSpec((C, C), lambda b, qi: (0, 0)),              # wv^T
            pl.BlockSpec((1, C), lambda b, qi: (0, 0)),              # bv row
            pl.BlockSpec((1, 1), lambda b, qi: (0, 0)),              # gamma
        ],
        out_specs=(pl.BlockSpec((None, TQ, C), lambda b, qi: (b, qi, 0)),
                   pl.BlockSpec((None, TQ, N), lambda b, qi: (b, qi, 0))),
        compiler_params=pltpu.CompilerParams(
            dimension_semantics=("parallel", "parallel")),
    )(x, x_t, x_t, wq2, bq2, wk2, bk2, wv_t, bv_row, gamma2)

    out = jnp.transpose(out_t, (0, 2, 1)).reshape(B, C, W, H)
    return out, attn


def ref_forward(x_nchw, wq, bq, wk, bk, wv, bv, gamma):
    """Pure-JAX reference mirroring the PyTorch forward."""
    B, C, W, H = x_nchw.shape
    N = W * H
    xf = x_nchw.reshape(B, C, N).astype(jnp.float32)
    q = jnp.einsum('oc,bcn->bon', wq.reshape(1, C), xf) + bq.reshape(1, 1, 1)   # (B, 1, N)
    k = jnp.einsum('oc,bcn->bon', wk.reshape(1, C), xf) + bk.reshape(1, 1, 1)   # (B, 1, N)
    energy = jnp.einsum('bon,bom->bnm', q, k)                                   # (B, N, N)
    attention = jax.nn.softmax(energy, axis=-1)
    v = jnp.einsum('oc,bcn->bon', wv.reshape(C, C), xf) + bv.reshape(1, C, 1)   # (B, C, N)
    out = jnp.einsum('bcn,bmn->bcm', v, attention)                              # (B, C, N)
    out = gamma.reshape(()) * out + xf
    return out.reshape(B, C, W, H), attention


if __name__ == "__main__":
    B, C, W, H = 2, 4, 16, 16

    key = jax.random.PRNGKey(0)
    kx, kwq, kbq, kwk, kbk, kwv, kbv = jax.random.split(key, 7)

    x = jax.random.normal(kx, (B, C, W, H), dtype=jnp.float32)

    # Conv2d(k=1) weights are (out, in, 1, 1) in PyTorch; kept here as (out, in) / (out,).
    wq = jax.random.normal(kwq, (1, C), dtype=jnp.float32) * 0.5
    bq = jax.random.normal(kbq, (1,), dtype=jnp.float32) * 0.1
    wk = jax.random.normal(kwk, (1, C), dtype=jnp.float32) * 0.5
    bk = jax.random.normal(kbk, (1,), dtype=jnp.float32) * 0.1
    wv = jax.random.normal(kwv, (C, C), dtype=jnp.float32) * 0.5
    bv = jax.random.normal(kbv, (C,), dtype=jnp.float32) * 0.1

    ok = True
    # gamma = 0 matches nn.Parameter(torch.zeros(1)) init; gamma = 0.5 exercises the
    # full gamma*attn_out + x residual path.
    for g in (0.0, 0.5):
        gamma = jnp.full((1,), g, dtype=jnp.float32)
        out, attn = self_attn(x, wq, bq, wk, bk, wv, bv, gamma)
        out, attn = jax.block_until_ready((out, attn))

        out_ref, attn_ref = ref_forward(x, wq, bq, wk, bk, wv, bv, gamma)
        ok &= out.shape == (B, C, W, H) and attn.shape == (B, W * H, W * H)
        ok &= bool(jnp.allclose(out, out_ref, atol=5e-5, rtol=5e-5))
        ok &= bool(jnp.allclose(attn, attn_ref, atol=5e-5, rtol=5e-5))

    assert ok
    print("KERNEL_OK")
</pallas_src>

<mosaic_0001>
module attributes {stable_mosaic.version = 11 : i64} {
  func.func @_self_attn_kernel(%arg0: i32, %arg1: i32, %arg2: memref<1x4x256xf32, #tpu.memory_space<vmem>>, %arg3: memref<1x256x4xf32, #tpu.memory_space<vmem>>, %arg4: memref<1x128x4xf32, #tpu.memory_space<vmem>>, %arg5: memref<1x4xf32, #tpu.memory_space<vmem>>, %arg6: memref<1x1xf32, #tpu.memory_space<vmem>>, %arg7: memref<1x4xf32, #tpu.memory_space<vmem>>, %arg8: memref<1x1xf32, #tpu.memory_space<vmem>>, %arg9: memref<4x4xf32, #tpu.memory_space<vmem>>, %arg10: memref<1x4xf32, #tpu.memory_space<vmem>>, %arg11: memref<1x1xf32, #tpu.memory_space<vmem>>, %arg12: memref<1x128x4xf32, #tpu.memory_space<vmem>>, %arg13: memref<1x128x256xf32, #tpu.memory_space<vmem>>) attributes {dimension_semantics = [#tpu.dimension_semantics<parallel>, #tpu.dimension_semantics<parallel>], iteration_bounds = array<i64: 2, 2>, scalar_prefetch = 0 : i64, scratch_operands = 0 : i64, tpu.core_type = #tpu.core_type<tc>, window_params = [{transform_indices = @transform_0, window_bounds = array<i64: 1, 4, 256>}, {transform_indices = @transform_1, window_bounds = array<i64: 1, 256, 4>}, {transform_indices = @transform_2, window_bounds = array<i64: 1, 128, 4>}, {pipeline_mode = #tpu.pipeline_mode<synchronous>, transform_indices = @transform_3, window_bounds = array<i64: 1, 4>}, {pipeline_mode = #tpu.pipeline_mode<synchronous>, transform_indices = @transform_4, window_bounds = array<i64: 1, 1>}, {pipeline_mode = #tpu.pipeline_mode<synchronous>, transform_indices = @transform_5, window_bounds = array<i64: 1, 4>}, {pipeline_mode = #tpu.pipeline_mode<synchronous>, transform_indices = @transform_6, window_bounds = array<i64: 1, 1>}, {pipeline_mode = #tpu.pipeline_mode<synchronous>, transform_indices = @transform_7, window_bounds = array<i64: 4, 4>}, {pipeline_mode = #tpu.pipeline_mode<synchronous>, transform_indices = @transform_8, window_bounds = array<i64: 1, 4>}, {pipeline_mode = #tpu.pipeline_mode<synchronous>, transform_indices = @transform_9, window_bounds = array<i64: 1, 1>}, {transform_indices = @transform_10, window_bounds = array<i64: 1, 128, 4>}, {transform_indices = @transform_11, window_bounds = array<i64: 1, 128, 256>}]} {
    %c0 = arith.constant 0 : index
    %c0_0 = arith.constant 0 : index
    %c0_1 = arith.constant 0 : index
    %0 = vector.load %arg2[%c0, %c0_0, %c0_1] : memref<1x4x256xf32, #tpu.memory_space<vmem>>, vector<1x4x256xf32>
    %1 = vector.shape_cast %0 : vector<1x4x256xf32> to vector<4x256xf32>
    %c0_2 = arith.constant 0 : index
    %c0_3 = arith.constant 0 : index
    %c0_4 = arith.constant 0 : index
    %2 = vector.load %arg3[%c0_2, %c0_3, %c0_4] : memref<1x256x4xf32, #tpu.memory_space<vmem>>, vector<1x256x4xf32>
    %3 = vector.shape_cast %2 : vector<1x256x4xf32> to vector<256x4xf32>
    %c0_5 = arith.constant 0 : index
    %c0_6 = arith.constant 0 : index
    %c0_7 = arith.constant 0 : index
    %4 = vector.load %arg4[%c0_5, %c0_6, %c0_7] : memref<1x128x4xf32, #tpu.memory_space<vmem>>, vector<1x128x4xf32>
    %5 = vector.shape_cast %4 : vector<1x128x4xf32> to vector<128x4xf32>
    %6 = vector.extract_strided_slice %1 {offsets = [0, 0], sizes = [1, 256], strides = [1, 1]} : vector<4x256xf32> to vector<1x256xf32>
    %c0_8 = arith.constant 0 : index
    %c0_9 = arith.constant 0 : index
    %7 = vector.load %arg7[%c0_8, %c0_9] : memref<1x4xf32, #tpu.memory_space<vmem>>, vector<1x1xf32>
    %8 = vector.broadcast %7 : vector<1x1xf32> to vector<1x256xf32>
    %9 = arith.mulf %6, %8 : vector<1x256xf32>
    %10 = vector.extract_strided_slice %1 {offsets = [1, 0], sizes = [1, 256], strides = [1, 1]} : vector<4x256xf32> to vector<1x256xf32>
    %c0_10 = arith.constant 0 : index
    %c1 = arith.constant 1 : index
    %11 = vector.load %arg7[%c0_10, %c1] : memref<1x4xf32, #tpu.memory_space<vmem>>, vector<1x1xf32>
    %12 = vector.broadcast %11 : vector<1x1xf32> to vector<1x256xf32>
    %13 = arith.mulf %10, %12 : vector<1x256xf32>
    %14 = arith.addf %9, %13 : vector<1x256xf32>
    %15 = vector.extract_strided_slice %1 {offsets = [2, 0], sizes = [1, 256], strides = [1, 1]} : vector<4x256xf32> to vector<1x256xf32>
    %c0_11 = arith.constant 0 : index
    %c2 = arith.constant 2 : index
    %16 = vector.load %arg7[%c0_11, %c2] : memref<1x4xf32, #tpu.memory_space<vmem>>, vector<1x1xf32>
    %17 = vector.broadcast %16 : vector<1x1xf32> to vector<1x256xf32>
    %18 = arith.mulf %15, %17 : vector<1x256xf32>
    %19 = arith.addf %14, %18 : vector<1x256xf32>
    %20 = vector.extract_strided_slice %1 {offsets = [3, 0], sizes = [1, 256], strides = [1, 1]} : vector<4x256xf32> to vector<1x256xf32>
    %c0_12 = arith.constant 0 : index
    %c3 = arith.constant 3 : index
    %21 = vector.load %arg7[%c0_12, %c3] : memref<1x4xf32, #tpu.memory_space<vmem>>, vector<1x1xf32>
    %22 = vector.broadcast %21 : vector<1x1xf32> to vector<1x256xf32>
    %23 = arith.mulf %20, %22 : vector<1x256xf32>
    %24 = arith.addf %19, %23 : vector<1x256xf32>
    %c0_13 = arith.constant 0 : index
    %c0_14 = arith.constant 0 : index
    %25 = vector.load %arg8[%c0_13, %c0_14] : memref<1x1xf32, #tpu.memory_space<vmem>>, vector<1x1xf32>
    %26 = vector.broadcast %25 : vector<1x1xf32> to vector<1x256xf32>
    %27 = arith.addf %24, %26 : vector<1x256xf32>
    %28 = vector.extract_strided_slice %5 {offsets = [0, 0], sizes = [128, 1], strides = [1, 1]} : vector<128x4xf32> to vector<128x1xf32>
    %c0_15 = arith.constant 0 : index
    %c0_16 = arith.constant 0 : index
    %29 = vector.load %arg5[%c0_15, %c0_16] : memref<1x4xf32, #tpu.memory_space<vmem>>, vector<1x1xf32>
    %30 = vector.broadcast %29 : vector<1x1xf32> to vector<128x1xf32>
    %31 = arith.mulf %28, %30 : vector<128x1xf32>
    %32 = vector.extract_strided_slice %5 {offsets = [0, 1], sizes = [128, 1], strides = [1, 1]} : vector<128x4xf32> to vector<128x1xf32>
    %c0_17 = arith.constant 0 : index
    %c1_18 = arith.constant 1 : index
    %33 = vector.load %arg5[%c0_17, %c1_18] : memref<1x4xf32, #tpu.memory_space<vmem>>, vector<1x1xf32>
    %34 = vector.broadcast %33 : vector<1x1xf32> to vector<128x1xf32>
    %35 = arith.mulf %32, %34 : vector<128x1xf32>
    %36 = arith.addf %31, %35 : vector<128x1xf32>
    %37 = vector.extract_strided_slice %5 {offsets = [0, 2], sizes = [128, 1], strides = [1, 1]} : vector<128x4xf32> to vector<128x1xf32>
    %c0_19 = arith.constant 0 : index
    %c2_20 = arith.constant 2 : index
    %38 = vector.load %arg5[%c0_19, %c2_20] : memref<1x4xf32, #tpu.memory_space<vmem>>, vector<1x1xf32>
    %39 = vector.broadcast %38 : vector<1x1xf32> to vector<128x1xf32>
    %40 = arith.mulf %37, %39 : vector<128x1xf32>
    %41 = arith.addf %36, %40 : vector<128x1xf32>
    %42 = vector.extract_strided_slice %5 {offsets = [0, 3], sizes = [128, 1], strides = [1, 1]} : vector<128x4xf32> to vector<128x1xf32>
    %c0_21 = arith.constant 0 : index
    %c3_22 = arith.constant 3 : index
    %43 = vector.load %arg5[%c0_21, %c3_22] : memref<1x4xf32, #tpu.memory_space<vmem>>, vector<1x1xf32>
    %44 = vector.broadcast %43 : vector<1x1xf32> to vector<128x1xf32>
    %45 = arith.mulf %42, %44 : vector<128x1xf32>
    %46 = arith.addf %41, %45 : vector<128x1xf32>
    %c0_23 = arith.constant 0 : index
    %c0_24 = arith.constant 0 : index
    %47 = vector.load %arg6[%c0_23, %c0_24] : memref<1x1xf32, #tpu.memory_space<vmem>>, vector<1x1xf32>
    %48 = vector.broadcast %47 : vector<1x1xf32> to vector<128x1xf32>
    %49 = arith.addf %46, %48 : vector<128x1xf32>
    %50 = vector.extract_strided_slice %3 {offsets = [0, 0], sizes = [256, 1], strides = [1, 1]} : vector<256x4xf32> to vector<256x1xf32>
    %c0_25 = arith.constant 0 : index
    %c0_26 = arith.constant 0 : index
    %51 = vector.load %arg9[%c0_25, %c0_26] : memref<4x4xf32, #tpu.memory_space<vmem>>, vector<1x4xf32>
    %52 = vector.broadcast %50 : vector<256x1xf32> to vector<256x4xf32>
    %53 = vector.broadcast %51 : vector<1x4xf32> to vector<256x4xf32>
    %54 = arith.mulf %52, %53 : vector<256x4xf32>
    %55 = vector.extract_strided_slice %3 {offsets = [0, 1], sizes = [256, 1], strides = [1, 1]} : vector<256x4xf32> to vector<256x1xf32>
    %c1_27 = arith.constant 1 : index
    %c0_28 = arith.constant 0 : index
    %56 = vector.load %arg9[%c1_27, %c0_28] : memref<4x4xf32, #tpu.memory_space<vmem>>, vector<1x4xf32>
    %57 = vector.broadcast %55 : vector<256x1xf32> to vector<256x4xf32>
    %58 = vector.broadcast %56 : vector<1x4xf32> to vector<256x4xf32>
    %59 = arith.mulf %57, %58 : vector<256x4xf32>
    %60 = arith.addf %54, %59 : vector<256x4xf32>
    %61 = vector.extract_strided_slice %3 {offsets = [0, 2], sizes = [256, 1], strides = [1, 1]} : vector<256x4xf32> to vector<256x1xf32>
    %c2_29 = arith.constant 2 : index
    %c0_30 = arith.constant 0 : index
    %62 = vector.load %arg9[%c2_29, %c0_30] : memref<4x4xf32, #tpu.memory_space<vmem>>, vector<1x4xf32>
    %63 = vector.broadcast %61 : vector<256x1xf32> to vector<256x4xf32>
    %64 = vector.broadcast %62 : vector<1x4xf32> to vector<256x4xf32>
    %65 = arith.mulf %63, %64 : vector<256x4xf32>
    %66 = arith.addf %60, %65 : vector<256x4xf32>
    %67 = vector.extract_strided_slice %3 {offsets = [0, 3], sizes = [256, 1], strides = [1, 1]} : vector<256x4xf32> to vector<256x1xf32>
    %c3_31 = arith.constant 3 : index
    %c0_32 = arith.constant 0 : index
    %68 = vector.load %arg9[%c3_31, %c0_32] : memref<4x4xf32, #tpu.memory_space<vmem>>, vector<1x4xf32>
    %69 = vector.broadcast %67 : vector<256x1xf32> to vector<256x4xf32>
    %70 = vector.broadcast %68 : vector<1x4xf32> to vector<256x4xf32>
    %71 = arith.mulf %69, %70 : vector<256x4xf32>
    %72 = arith.addf %66, %71 : vector<256x4xf32>
    %c0_33 = arith.constant 0 : index
    %c0_34 = arith.constant 0 : index
    %73 = vector.load %arg10[%c0_33, %c0_34] : memref<1x4xf32, #tpu.memory_space<vmem>>, vector<1x4xf32>
    %74 = vector.broadcast %73 : vector<1x4xf32> to vector<256x4xf32>
    %75 = arith.addf %72, %74 : vector<256x4xf32>
    %76 = vector.broadcast %49 : vector<128x1xf32> to vector<128x256xf32>
    %77 = vector.broadcast %27 : vector<1x256xf32> to vector<128x256xf32>
    %78 = arith.mulf %76, %77 : vector<128x256xf32>
    %cst = arith.constant dense<0xFF800000> : vector<1xf32>
    %79 = vector.multi_reduction <maximumf>, %27, %cst [1] : vector<1x256xf32> to vector<1xf32>
    %80 = vector.shape_cast %79 : vector<1xf32> to vector<1x1xf32>
    %cst_35 = arith.constant dense<0x7F800000> : vector<1xf32>
    %81 = vector.multi_reduction <minimumf>, %27, %cst_35 [1] : vector<1x256xf32> to vector<1xf32>
    %82 = vector.shape_cast %81 : vector<1xf32> to vector<1x1xf32>
    %cst_36 = arith.constant 0.000000e+00 : f32
    %83 = vector.broadcast %cst_36 : f32 to vector<128x1xf32>
    %84 = arith.cmpf oge, %49, %83 : vector<128x1xf32>
    %85 = vector.broadcast %80 : vector<1x1xf32> to vector<128x1xf32>
    %86 = arith.mulf %49, %85 : vector<128x1xf32>
    %87 = vector.broadcast %82 : vector<1x1xf32> to vector<128x1xf32>
    %88 = arith.mulf %49, %87 : vector<128x1xf32>
    %89 = arith.select %84, %86, %88 : vector<128x1xi1>, vector<128x1xf32>
    %90 = vector.broadcast %89 : vector<128x1xf32> to vector<128x256xf32>
    %91 = arith.subf %78, %90 : vector<128x256xf32>
    %92 = math.exp %91 : vector<128x256xf32>
    %cst_37 = arith.constant dense<0.000000e+00> : vector<128xf32>
    %93 = vector.multi_reduction <add>, %92, %cst_37 [1] : vector<128x256xf32> to vector<128xf32>
    %94 = vector.shape_cast %93 : vector<128xf32> to vector<128x1xf32>
    %95 = tpu.reciprocal %94 : vector<128x1xf32> -> vector<128x1xf32>
    %96 = vector.broadcast %95 : vector<128x1xf32> to vector<128x256xf32>
    %97 = arith.mulf %92, %96 : vector<128x256xf32>
    %c0_38 = arith.constant 0 : index
    %c0_39 = arith.constant 0 : index
    %c0_40 = arith.constant 0 : index
    %98 = vector.load %arg13[%c0_38, %c0_39, %c0_40] : memref<1x128x256xf32, #tpu.memory_space<vmem>>, vector<1x128x256xf32>
    %99 = vector.shape_cast %98 : vector<1x128x256xf32> to vector<128x256xf32>
    %100 = vector.shape_cast %97 : vector<128x256xf32> to vector<1x128x256xf32>
    tpu.vector_store %arg13[%c0_38, %c0_39, %c0_40], %100 {strides = array<i32>} : memref<1x128x256xf32, #tpu.memory_space<vmem>>, vector<1x128x256xf32>,
    %cst_41 = arith.constant dense<0.000000e+00> : vector<128x4xf32>
    %101 = tpu.matmul %97, %75, %cst_41 {dimension_numbers = #tpu.dot_dimension_numbers<[1], [0], [0], [1], [0, 0, 1, 1], [], []>} : vector<128x256xf32>, vector<256x4xf32>, vector<128x4xf32> -> vector<128x4xf32>
    %c0_42 = arith.constant 0 : index
    %c0_43 = arith.constant 0 : index
    %102 = vector.load %arg11[%c0_42, %c0_43] : memref<1x1xf32, #tpu.memory_space<vmem>>, vector<1x1xf32>
    %103 = vector.broadcast %102 : vector<1x1xf32> to vector<128x4xf32>
    %104 = arith.mulf %103, %101 : vector<128x4xf32>
    %105 = arith.addf %104, %5 : vector<128x4xf32>
    %c0_44 = arith.constant 0 : index
    %c0_45 = arith.constant 0 : index
    %c0_46 = arith.constant 0 : index
    %106 = vector.load %arg12[%c0_44, %c0_45, %c0_46] : memref<1x128x4xf32, #tpu.memory_space<vmem>>, vector<1x128x4xf32>
    %107 = vector.shape_cast %106 : vector<1x128x4xf32> to vector<128x4xf32>
    %108 = vector.shape_cast %105 : vector<128x4xf32> to vector<1x128x4xf32>
    tpu.vector_store %arg12[%c0_44, %c0_45, %c0_46], %108 {strides = array<i32>} : memref<1x128x4xf32, #tpu.memory_space<vmem>>, vector<1x128x4xf32>,
    return
  }
  func.func @transform_0(%arg0: i32, %arg1: i32) -> (i32, i32, i32) {
    %c0_i32 = arith.constant 0 : i32
    %c0_i32_0 = arith.constant 0 : i32
    %c0_i32_1 = arith.constant 0 : i32
    return %arg0, %c0_i32, %c0_i32_0 : i32, i32, i32
  }
  func.func @transform_1(%arg0: i32, %arg1: i32) -> (i32, i32, i32) {
    %c0_i32 = arith.constant 0 : i32
    %c0_i32_0 = arith.constant 0 : i32
    %c0_i32_1 = arith.constant 0 : i32
    return %arg0, %c0_i32, %c0_i32_0 : i32, i32, i32
  }
  func.func @transform_2(%arg0: i32, %arg1: i32) -> (i32, i32, i32) {
    %c0_i32 = arith.constant 0 : i32
    %c0_i32_0 = arith.constant 0 : i32
    return %arg0, %arg1, %c0_i32 : i32, i32, i32
  }
  func.func @transform_3(%arg0: i32, %arg1: i32) -> (i32, i32) {
    %c0_i32 = arith.constant 0 : i32
    %c0_i32_0 = arith.constant 0 : i32
    %c0_i32_1 = arith.constant 0 : i32
    return %c0_i32, %c0_i32_0 : i32, i32
  }
  func.func @transform_4(%arg0: i32, %arg1: i32) -> (i32, i32) {
    %c0_i32 = arith.constant 0 : i32
    %c0_i32_0 = arith.constant 0 : i32
    %c0_i32_1 = arith.constant 0 : i32
    return %c0_i32, %c0_i32_0 : i32, i32
  }
  func.func @transform_5(%arg0: i32, %arg1: i32) -> (i32, i32) {
    %c0_i32 = arith.constant 0 : i32
    %c0_i32_0 = arith.constant 0 : i32
    %c0_i32_1 = arith.constant 0 : i32
    return %c0_i32, %c0_i32_0 : i32, i32
  }
  func.func @transform_6(%arg0: i32, %arg1: i32) -> (i32, i32) {
    %c0_i32 = arith.constant 0 : i32
    %c0_i32_0 = arith.constant 0 : i32
    %c0_i32_1 = arith.constant 0 : i32
    return %c0_i32, %c0_i32_0 : i32, i32
  }
  func.func @transform_7(%arg0: i32, %arg1: i32) -> (i32, i32) {
    %c0_i32 = arith.constant 0 : i32
    %c0_i32_0 = arith.constant 0 : i32
    %c0_i32_1 = arith.constant 0 : i32
    return %c0_i32, %c0_i32_0 : i32, i32
  }
  func.func @transform_8(%arg0: i32, %arg1: i32) -> (i32, i32) {
    %c0_i32 = arith.constant 0 : i32
    %c0_i32_0 = arith.constant 0 : i32
    %c0_i32_1 = arith.constant 0 : i32
    return %c0_i32, %c0_i32_0 : i32, i32
  }
  func.func @transform_9(%arg0: i32, %arg1: i32) -> (i32, i32) {
    %c0_i32 = arith.constant 0 : i32
    %c0_i32_0 = arith.constant 0 : i32
    %c0_i32_1 = arith.constant 0 : i32
    return %c0_i32, %c0_i32_0 : i32, i32
  }
  func.func @transform_10(%arg0: i32, %arg1: i32) -> (i32, i32, i32) {
    %c0_i32 = arith.constant 0 : i32
    %c0_i32_0 = arith.constant 0 : i32
    return %arg0, %arg1, %c0_i32 : i32, i32, i32
  }
  func.func @transform_11(%arg0: i32, %arg1: i32) -> (i32, i32, i32) {
    %c0_i32 = arith.constant 0 : i32
    %c0_i32_0 = arith.constant 0 : i32
    return %arg0, %arg1, %c0_i32 : i32, i32, i32
  }
}

</mosaic_0001>

<bundles_post_ra>
// kernel: tpu_custom_call.1
= control target key start
LH: loop header
LB: loop body
LE: loop exit
PB: predicated region body
PF: predicated region fallthrough
CT: control target
= control target key end

     0   :  { %s4862_s0 = inlined_call_operand.vmem [shape: f32[2,4,256], index: 0, kind: input, shape index: {}]   ;;  %s4863_s1 = inlined_call_operand.vmem [shape: f32[2,256,4], index: 1, kind: input, shape index: {}]   ;;  %s4864_s2 = inlined_call_operand.vmem [shape: f32[2,256,4], index: 2, kind: input, shape index: {}]   ;;  %s4865_s3 = inlined_call_operand.vmem [shape: f32[1,4], index: 3, kind: input, shape index: {}]   ;;  %s4866_s4 = inlined_call_operand.<no memory space> [shape: f32[1,1], index: 4, kind: input, shape index: {}]   ;;  %s4867_s5 = inlined_call_operand.vmem [shape: f32[1,4], index: 5, kind: input, shape index: {}]   ;;  %s4868_s7 = inlined_call_operand.vmem [shape: f32[4,4], index: 7, kind: input, shape index: {}]   ;;  %s4869_s8 = inlined_call_operand.vmem [shape: f32[1,4], index: 8, kind: input, shape index: {}]   ;;  %s4870_s10 = inlined_call_operand.vmem [shape: f32[2,256,4], index: 10, kind: output, shape index: {0}]   ;;  %s4871_s11 = inlined_call_operand.hbm [shape: f32[2,256,256], index: 11, kind: output, shape index: {1}]   ;;  %s4872_s6 = inlined_call_operand.<no memory space> [shape: f32[1,1], index: 6, kind: input, shape index: {}]   ;;  %s4873_s9 = inlined_call_operand.<no memory space> [shape: f32[1,1], index: 9, kind: input, shape index: {}]  }
   0x1   :  { %4924 = sst [smem:[#allocation86_spill]] %s4862_s0  ;;  %v17_v0 = vstv %s4866_s4  ;;  %v19_v1 = vstv %s4872_s6  ;;  %v21_v2 = vstv %s4873_s9 }
   0x2   :  { %4925 = sst [smem:[#allocation87_spill]] %s4863_s1  ;;  %18 = vst [vmem:[#allocation2] sm:$0x1] %v17_v0  ;;  %20 = vst [vmem:[#allocation3] sm:$0x1] %v19_v1 }
   0x3   :  { %4926 = sst [smem:[#allocation88_spill]] %s4864_s2  ;;  %22 = vst [vmem:[#allocation4] sm:$0x1] %v21_v2 }
   0x4   :  { %4927 = sst [smem:[#allocation89_spill]] %s4865_s3 }
   0x5   :  { %4928 = sst [smem:[#allocation90_spill]] %s4867_s5 }
   0x6   :  { %23 = vsyncpa [#allocation6], 0 }
   0x7   :  { %25 = vsyncpa [#allocation6 + $0x1], 0  ;;  %s3150_s23 = smov 0   ;;  %s3152_s24 = smov 0  }
   0x8   :  { %s3154_s25 = smov 0   ;;  %s3156_s4 = smov 0  }
   0x9   :  { %s3158_s26 = smov 0   ;;  %s3160_s6 = smov 0  }
   0xa   :  { %s3162_s27 = smov 0   ;;  %s3164_s9 = smov 0  }
   0xb LB: > { %s2575_s28 = sadd.s32 4294967295, %s3069_s9   ;;  %s2576_s29 = sadd.s32 4294967294, %s3069_s9   ;;  %s3069_s9 = sphi %s3164_s9, %s31_s9   ;;  %s3065_s27 = sphi %s3162_s27, %s5184_s27   ;;  %s3061_s6 = sphi %s3160_s6, %s5183_s6   ;;  %s3057_s26 = sphi %s3158_s26, %s5182_s26   ;;  %s3053_s4 = sphi %s3156_s4, %s5181_s4   ;;  %s3049_s25 = sphi %s3154_s25, %s5180_s25   ;;  %s3045_s24 = sphi %s3152_s24, %s5179_s24   ;;  %s3041_s23 = sphi %s3150_s23, %s5178_s23  }
   0xc   : > { %s40_s30 = sadd.s32 1, %s3061_s6  ;;  %s43_s12 = sadd.s32 1, %s3065_s27 }
   0xd   : > { %p41_p0 = scmp.ge.s32.totalorder %s40_s30, 2  ;;  %p317_p1 = scmp.ne.s32.totalorder %s3049_s25, %s3045_s24 }
   0xe   : > { %p318_p2 = scmp.eq.s32.totalorder %s2575_s28, 3  ;;  %p323_p5 = scmp.ne.s32.totalorder %s3045_s24, %s3041_s23 }
   0xf   : > { %s5186_s30 = smov (%p41_p0, %s40_s30), 0  ;;  %s5188_s12 = smov (!%p41_p0, %s43_s12), %s3065_s27 }
  0x10   : > { %s303_s13 = ssub.s32 %s3061_s6, %s5186_s30  ;;  %p3201_p3 = por %p318_p2, %p317_p1 }
  0x11   : > { %p45_p4 = scmp.ge.s32.totalorder %s5188_s12, 2  ;;  %p324_p6 = scmp.eq.s32.totalorder %s2576_s29, 3 }
  0x12   : > { %p2579_p7 = scmp.ge.s32.totalorder %s3069_s9, 1  ;;  %p392_p9 = scmp.lt.s32.totalorder %s3069_s9, 5 }
  0x13   : > { %s5190_s12 = smov (%p45_p4, %s5188_s12), 0  ;;  %p3210_p8 = por %p324_p6, %p323_p5 }
  0x14   : > { %s302_s16 = ssub.s32 %s3065_s27, %s5190_s12  ;;  %s307_s17 = sadd.s32 1, %s3049_s25 }
  0x15   : > { %s304_s18 = sor.u32 %s303_s13, %s302_s16  ;;  %p393_p10 = pnand %p2579_p7, %p392_p9 }
  0x16   : > { %p305_p11 = scmp.eq.s32.totalorder %s304_s18, 0 }
  0x17   : > { %396 = sbr.rel (%p393_p10) target bundleno = 1257 (0x4e9), region = 60 }
  0x18   : > { %s3219_s19 = scalar_select %p305_p11, %s3049_s25, %s307_s17  }
  0x1e   : > { %s4931_s5 = sld [smem:[#allocation90_spill]]  ;;  %v4876_v4 = vmov 2   ;;  %v4878_v5 = vmov 0   ;;  %p455_p12 = scmp.lt.s32.totalorder %s3057_s26, 1  ;;  %v4874_v6 = vmov 3   ;;  %v3074_v7 = vmov 1  }
  0x1f   : > { %2822 = vset.pattern.permute.xlu1 %v4876_v4  ;;  %2820 = vset.pattern.permute.xlu0 %v4878_v5  ;;  %s2585_s22 = sshll.u32 %s3053_s4, 4  ;;  %s4932_s3 = sld [smem:[#allocation89_spill]]  ;;  %v588_v9 = vld [vmem:[#allocation3] sm:$0x1]  ;;  %v541_v46 = vlaneseq  ;;  %vm1811_vm0 = vcmask 1040384  }
  0x20   : > { %p468_p13 = scmp.lt.s32.totalorder %s2585_s22, 31  ;;  %s4933_s2 = sld [smem:[#allocation88_spill]] }
  0x21   : > { %s3229_s28 = scalar_select %p455_p12, %s3057_s26, 1  ;;  %v542_v48 = vshrl.u32 %v541_v46, 7 }
  0x22   : > { %s5192_s22 = smov (!%p468_p13, %s2585_s22), 31  ;;  %s3077_s17 = smov 125  }
  0x23   : > { %s2586_s29 = sshll.u32 %s3229_s28, 5  ;;  %s2610_s18 = sshll.u32 %s3229_s28, 8  ;;  %v3389_v49 = vsub.s32 0, %v542_v48 }
  0x24   : > { %v535_v3 = vld [vmem:[%s4931_s5] sm:$0x1]  ;;  %s3234_s13 = sadd.s32 %s2586_s29, %s5192_s22  ;;  %s3075_s22 = smov 127  }
  0x25   : > { %561 = vperm.xlu1 %2822, %v535_v3   ;;  %538 = vperm.xlu0 %2820, %v535_v3   ;;  %s4922_s16 = sshll.u32 %s3234_s13, 3  ;;  %v2594_v8 = vld [vmem:[%s4932_s3] ss:$0 sm:$0xff]  ;;  %s3076_s29 = smov 126  }
  0x26   : > { %s3245_s5 = scalar_lea.vmem %s4933_s2, %s4922_s16  ;;  %s4938_s1 = sld [smem:[#allocation87_spill]] }
  0x27   : > { %v520_v10 = vld [vmem:[%s3245_s5 + $0x8] sm:$0xff]  ;;  %v519_v11 = vld [vmem:[%s3245_s5] sm:$0xff]  ;;  %v521_v13 = vld [vmem:[%s3245_s5 + $0x10] sm:$0xff]  ;;  %s4940_s0 = sld [smem:[#allocation86_spill]] }
  0x28   : > { %v3249_v12 = vmul.f32 %v2594_v8, %v519_v11  ;;  %v3253_v14 = vmul.f32 %v2594_v8, %v520_v10  ;;  %v3257_v15 = vmul.f32 %v2594_v8, %v521_v13  ;;  %v522_v16 = vld [vmem:[%s3245_s5 + $0x18] sm:$0xff]  ;;  %v523_v17 = vld [vmem:[%s3245_s5 + $0x20] sm:$0xff]  ;;  %v524_v20 = vld [vmem:[%s3245_s5 + $0x28] sm:$0xff] }
  0x29   : > { %2823 = vset.pattern.permute.xlu1 %v4874_v6  ;;  %2821 = vset.pattern.permute.xlu0 %v3074_v7  ;;  %v3263_v18 = vmul.f32 %v2594_v8, %v522_v16  ;;  %v3267_v19 = vmul.f32 %v2594_v8, %v523_v17  ;;  %v525_v21 = vld [vmem:[%s3245_s5 + $0x30] sm:$0xff]  ;;  %v3273_v22 = vmul.f32 %v2594_v8, %v524_v20  ;;  %v526_v24 = vld [vmem:[%s3245_s5 + $0x38] sm:$0xff]  ;;  %v527_v25 = vld [vmem:[%s3245_s5 + $0x40] sm:$0xff]  ;;  %v1767_v17 = vsub.s32 4, %v542_v48 }
  0x2a   : > { %575 = vperm.xlu1 %2823, %v535_v3   ;;  %547 = vperm.xlu0 %2821, %v535_v3   ;;  %v3277_v23 = vmul.f32 %v2594_v8, %v525_v21  ;;  %v3283_v26 = vmul.f32 %v2594_v8, %v526_v24  ;;  %v3287_v27 = vmul.f32 %v2594_v8, %v527_v25  ;;  %v528_v28 = vld [vmem:[%s3245_s5 + $0x48] sm:$0xff]  ;;  %v529_v29 = vld [vmem:[%s3245_s5 + $0x50] sm:$0xff]  ;;  %v530_v32 = vld [vmem:[%s3245_s5 + $0x58] sm:$0xff] }
  0x2b   : > { %v3293_v30 = vmul.f32 %v2594_v8, %v528_v28  ;;  %v3297_v31 = vmul.f32 %v2594_v8, %v529_v29  ;;  %v531_v33 = vld [vmem:[%s3245_s5 + $0x60] sm:$0xff]  ;;  %v3303_v34 = vmul.f32 %v2594_v8, %v530_v32  ;;  %v532_v36 = vld [vmem:[%s3245_s5 + $0x68] sm:$0xff]  ;;  %v533_v37 = vld [vmem:[%s3245_s5 + $0x70] sm:$0xff] }
  0x2c   : > { %4934 = vst [vmem:[#allocation8_spill] sm:$0xff] %v3277_v23  ;;  %4935 = vst [vmem:[#allocation9_spill] sm:$0xff] %v3283_v26  ;;  %v3307_v35 = vmul.f32 %v2594_v8, %v531_v33  ;;  %v3313_v38 = vmul.f32 %v2594_v8, %v532_v36  ;;  %v3317_v39 = vmul.f32 %v2594_v8, %v533_v37  ;;  %v534_v40 = vld [vmem:[%s3245_s5 + $0x78] sm:$0xff] }
  0x2d   : > { %v3322_v41 = vmul.f32 %v2594_v8, %v534_v40 }
  0x2e   : > { %2824 = vset.pattern.permute.xlu1 %v4878_v5  ;;  %638 = vrot.lane.b32.xlu0 %v3249_v12, %s3075_s22  ;;  %4936 = vst [vmem:[#allocation10_spill] sm:$0xff] %v3317_v39 }
  0x2f   : > { %591 = vperm.xlu1 %2824, %v588_v9   ;;  %4937 = vst [vmem:[#allocation11_spill] sm:$0xff] %v3322_v41 }
  0x32   : > { %642 = vrot.lane.b32.xlu0 %v3257_v15, %s3075_s22 }
  0x33   : > { %640 = vrot.lane.b32.xlu1 %v3253_v14, %s3075_s22 }
  0x36   : > { %646 = vrot.lane.b32.xlu0 %v3267_v19, %s3075_s22 }
  0x37   : > { %644 = vrot.lane.b32.xlu1 %v3263_v18, %s3075_s22 }
  0x3a   : > { %650 = vrot.lane.b32.xlu0 %v3277_v23, %s3075_s22 }
  0x3b   : > { %648 = vrot.lane.b32.xlu1 %v3273_v22, %s3075_s22 }
  0x3e   : > { %654 = vrot.lane.b32.xlu0 %v3287_v27, %s3075_s22 }
  0x3f   : > { %652 = vrot.lane.b32.xlu1 %v3283_v26, %s3075_s22 }
  0x42   : > { %658 = vrot.lane.b32.xlu0 %v3297_v31, %s3075_s22 }
  0x43   : > { %656 = vrot.lane.b32.xlu1 %v3293_v30, %s3075_s22 }
  0x46   : > { %662 = vrot.lane.b32.xlu0 %v3307_v35, %s3075_s22 }
  0x47   : > { %660 = vrot.lane.b32.xlu1 %v3303_v34, %s3075_s22 }
  0x4a   : > { %666 = vrot.lane.b32.xlu0 %v3317_v39, %s3075_s22 }
  0x4b   : > { %664 = vrot.lane.b32.xlu1 %v3313_v38, %s3075_s22 }
  0x4e   : > { %702 = vrot.lane.b32.xlu0 %v3249_v12, %s3076_s29 }
  0x4f   : > { %668 = vrot.lane.b32.xlu1 %v3322_v41, %s3075_s22  ;;  %s3361_s22 = scalar_lea.vmem %s4938_s1, %s2610_s18  ;;  %s2611_s18 = sshll.u32 %s3053_s4, 5 }
  0x50   : > { %v3366_v42 = vld [vmem:[%s3361_s22 + $0x8] sm:$0xff]  ;;  %v3371_v43 = vld [vmem:[%s3361_s22 + $0x20] sm:$0xff]  ;;  %v3376_v44 = vld [vmem:[%s3361_s22 + $0x10] sm:$0xff]  ;;  %s5176_s1 = sand.u32 1, %s3045_s24   ;;  %s3078_s4 = smov [#allocation5]  }
  0x51   : > { %4939 = vst [vmem:[#allocation12_spill] sm:$0xff] %v3376_v44  ;;  %v3381_v45 = vld [vmem:[%s3361_s22 + $0x30] sm:$0xff]  ;;  %v3385_v47 = vld [vmem:[%s3361_s22 + $0x40] sm:$0xff]  ;;  %v3544_v5 = vld [vmem:[%s3361_s22 + $0x88] sm:$0xff]  ;;  %s4737_s2 = scalar_lea.sflag [#allocation6], %s5176_s1 }
  0x52   : > { %706 = vrot.lane.b32.xlu0 %v3257_v15, %s3076_s29  ;;  %v3392_v52 = vld [vmem:[%s3361_s22 + $0x50] sm:$0xff]  ;;  %v3401_v55 = vld [vmem:[%s3361_s22 + $0x60] sm:$0xff] }
  0x53   : > { %704 = vrot.lane.b32.xlu1 %v3253_v14, %s3076_s29  ;;  %v3407_v0 = vld [vmem:[%s3361_s22 + $0x70] sm:$0xff]  ;;  %v3411_v10 = vld [vmem:[%s3361_s22 + $0x80] sm:$0xff] }
  0x54   : > { %4941 = vst [vmem:[#allocation13_spill] sm:$0xff] %v3411_v10  ;;  %v3418_v24 = vld [vmem:[%s3361_s22 + $0x90] sm:$0xff]  ;;  %v3429_v33 = vld [vmem:[%s3361_s22 + $0xa0] sm:$0xff] }
  0x55   : > { %4942 = vst [vmem:[#allocation14_spill] sm:$0xff] %v3418_v24  ;;  %4945 = vst [vmem:[#allocation17_spill] sm:$0xff] %v3429_v33 }
  0x56   : > { %710 = vrot.lane.b32.xlu0 %v3267_v19, %s3076_s29 }
  0x57   : > { %708 = vrot.lane.b32.xlu1 %v3263_v18, %s3076_s29 }
  0x5a   : > { %714 = vrot.lane.b32.xlu0 %v3277_v23, %s3076_s29 }
  0x5b   : > { %712 = vrot.lane.b32.xlu1 %v3273_v22, %s3076_s29 }
  0x5e   : > { %718 = vrot.lane.b32.xlu0 %v3287_v27, %s3076_s29 }
  0x5f   : > { %716 = vrot.lane.b32.xlu1 %v3283_v26, %s3076_s29 }
  0x62   : > { %722 = vrot.lane.b32.xlu0 %v3297_v31, %s3076_s29 }
  0x63   : > { %720 = vrot.lane.b32.xlu1 %v3293_v30, %s3076_s29 }
  0x66   : > { %726 = vrot.lane.b32.xlu0 %v3307_v35, %s3076_s29 }
  0x67   : > { %724 = vrot.lane.b32.xlu1 %v3303_v34, %s3076_s29 }
  0x6a   : > { %730 = vrot.lane.b32.xlu0 %v3317_v39, %s3076_s29 }
  0x6b   : > { %728 = vrot.lane.b32.xlu1 %v3313_v38, %s3076_s29 }
  0x6e   : > { %766 = vrot.lane.b32.xlu0 %v3249_v12, %s3077_s17 }
  0x6f   : > { %732 = vrot.lane.b32.xlu1 %v3322_v41, %s3076_s29  ;;  %s2609_s29 = sshll.u32 %s3229_s28, 3  ;;  %s4923_s28 = sand.u32 1, %s3045_s24  }
  0x70   : > { %s459_s20 = scalar_lea.vmem %s4940_s0, %s2609_s29  ;;  %s2580_s21 = sshll.u32 %s4923_s28, 8 }
  0x71   : > { %v486_v56 = vld [vmem:[%s459_s20] sm:$0xff]  ;;  %s4126_s29 = scalar_lea.vmem [#allocation5], %s2580_s21 }
  0x72   : > { %770 = vrot.lane.b32.xlu0 %v3257_v15, %s3077_s17  ;;  %s2432_s20 = sshll.u32 %s4126_s29, 4  ;;  %s4728_s20 = int_to_ptr.vmem [resolvable:$true] %s2432_s20 }
  0x73   : > { %768 = vrot.lane.b32.xlu1 %v3253_v14, %s3077_s17  ;;  %s2975_s3 = scalar_lea.vmem %s4728_s20, 4096 }
  0x74   : > { %p2976_p0 = scmp.ne.s32.totalorder %s4728_s20, %s2975_s3 }
  0x76   : > { %774 = vrot.lane.b32.xlu0 %v3267_v19, %s3077_s17  ;;  %p2977_p1 = pnand %p2976_p0, %p3201_p3 }
  0x77   : > { %772 = vrot.lane.b32.xlu1 %v3263_v18, %s3077_s17 }
  0x78   : > { %p2978_p2 = pneg %p2977_p1 }
  0x7a   : > { %778 = vrot.lane.b32.xlu0 %v3277_v23, %s3077_s17 }
  0x7b   : > { %776 = vrot.lane.b32.xlu1 %v3273_v22, %s3077_s17 }
  0x7e   : > { %782 = vrot.lane.b32.xlu0 %v3287_v27, %s3077_s17 }
  0x7f   : > { %780 = vrot.lane.b32.xlu1 %v3283_v26, %s3077_s17  ;;  %v4969_v26 = vmov 0  }
  0x82   : > { %786 = vrot.lane.b32.xlu0 %v3297_v31, %s3077_s17 }
  0x83   : > { %784 = vrot.lane.b32.xlu1 %v3293_v30, %s3077_s17 }
  0x86   : > { %790 = vrot.lane.b32.xlu0 %v3307_v35, %s3077_s17 }
  0x87   : > { %788 = vrot.lane.b32.xlu1 %v3303_v34, %s3077_s17 }
  0x8a   : > { %794 = vrot.lane.b32.xlu0 %v3317_v39, %s3077_s17 }
  0x8b   : > { %792 = vrot.lane.b32.xlu1 %v3313_v38, %s3077_s17 }
  0x8e   : > { %1056 = vperm.xlu0 %2821, %v3366_v42  }
  0x8f   : > { %796 = vrot.lane.b32.xlu1 %v3322_v41, %s3077_s17  ;;  %v3590_v41 = vld [vmem:[%s3361_s22 + $0xd8] sm:$0xff] }
  0x92   : > { %1068 = vperm.xlu0 %2821, %v3371_v43  }
  0x93   : > { %861 = vperm.xlu1 %2824, %v3366_v42  }
  0x97   : > { %866 = vperm.xlu1 %2824, %v3376_v44  }
  0x9b   : > { %876 = vperm.xlu1 %2824, %v3371_v43  }
  0x9f   : > { %886 = vperm.xlu1 %2824, %v3381_v45  }
  0xa3   : > { %896 = vperm.xlu1 %2824, %v3385_v47  }
  0xa4   : > { %v562_v50 = vpop.permute.xlu1 %561  ;;  %v539_v51 = vpop.permute.xlu0 %538 }
  0xa5   : > { %v567_v53 = vrot.slane %v562_v50, %v3389_v49  ;;  %v544_v54 = vrot.slane %v539_v51, %v3389_v49  ;;  %v3440_v50 = vld [vmem:[%s3361_s22 + $0xb0] sm:$0xff] }
  0xa6   : > { %4946 = vst [vmem:[#allocation18_spill] sm:$0xff] %v3440_v50 }
  0xa7   : > { %906 = vperm.xlu1 %2824, %v3392_v52   ;;  %v568_v61 = vmul.f32 %v567_v53, %v486_v56  ;;  %v545_v62 = vmul.f32 %v544_v54, %v486_v56  ;;  %v3537_v53 = vld [vmem:[%s3361_s22 + $0x78] sm:$0xff] }
  0xa8   : > { %4963 = vst [vmem:[#allocation35_spill] sm:$0xff] %v3537_v53 }
  0xa9   : > { %v576_v57 = vpop.permute.xlu1 %575  ;;  %v548_v58 = vpop.permute.xlu0 %547  ;;  %v2592_v8 = vrot.slane %v568_v61, 10 }
  0xaa   : > { %v581_v59 = vrot.slane %v576_v57, %v3389_v49  ;;  %v553_v60 = vrot.slane %v548_v58, %v3389_v49  ;;  %v3457_v58 = vld [vmem:[%s3361_s22 + $0xd0] sm:$0xff] }
  0xab   : > { %916 = vperm.xlu1 %2824, %v3401_v55   ;;  %4949 = vst [vmem:[#allocation21_spill] sm:$0xff] %v3457_v58 }
  0xac   : > { %v554_v63 = vmul.f32 %v553_v60, %v486_v56  ;;  %v582_v1 = vmul.f32 %v581_v59, %v486_v56  ;;  %v3451_v56 = vld [vmem:[%s3361_s22 + $0xc0] sm:$0xff] }
  0xad   : > { %4948 = vst [vmem:[#allocation20_spill] sm:$0xff] %v3451_v56  ;;  %v3463_v60 = vld [vmem:[%s3361_s22 + $0xe0] sm:$0xff] }
  0xae   : > { %v2591_v2 = vrot.slane %v554_v63, 9  ;;  %v592_v3 = vpop.permute.xlu1 %591  ;;  %v2593_v11 = vrot.slane %v582_v1, 11  ;;  %4950 = vst [vmem:[#allocation22_spill] sm:$0xff] %v3463_v60  ;;  %v3475_v1 = vld [vmem:[%s3361_s22] sm:$0xff] }
  0xaf   : > { %926 = vperm.xlu1 %2824, %v3407_v0   ;;  %v597_v21 = vrot.slane %v592_v3, %v3389_v49  ;;  %4953 = vst [vmem:[#allocation25_spill] sm:$0xff] %v3475_v1 }
  0xb0   : > { %v559_v9 = vadd.f32 %v2591_v2, %v545_v62  ;;  %v3469_v62 = vld [vmem:[%s3361_s22 + $0xf0] sm:$0xff] }
  0xb1   : > { %4951 = vst [vmem:[#allocation23_spill] sm:$0xff] %v3469_v62 }
  0xb2   : > { %v573_v13 = vadd.f32 %v2592_v8, %v559_v9  ;;  %v3413_v16 = vpop.permute.xlu1 %640  ;;  %v3487_v8 = vld [vmem:[%s3361_s22 + $0x18] sm:$0xff] }
  0xb3   : > { %936 = vperm.xlu1 %2824, %v3411_v10  }
  0xb4   : > { %v587_v20 = vadd.f32 %v2593_v11, %v573_v13  ;;  %v3498_v13 = vpop.permute.xlu0 %638 }
  0xb6   : > { %v598_v25 = vadd.f32 %v597_v21, %v587_v20  ;;  %v3420_v28 = vpop.permute.xlu1 %644  ;;  %v3512_v21 = vld [vmem:[%s3361_s22 + $0x48] sm:$0xff] }
  0xb7   : > { %946 = vperm.xlu1 %2824, %v3418_v24   ;;  %4957 = vst [vmem:[#allocation29_spill] sm:$0xff] %v3512_v21 }
  0xb8   : > { %v3424_v29 = vrot.slane %v598_v25, %v3389_v49  ;;  %v3426_v32 = vrot.slane %v598_v25, %v1767_v17  ;;  %v3503_v17 = vld [vmem:[%s3361_s22 + $0x38] sm:$0xff] }
  0xba   : > { %4943 = vst [vmem:[#allocation15_spill] sm:$0xff] %v3424_v29  ;;  %4944 = vst [vmem:[#allocation16_spill] sm:$0xff] %v3426_v32  ;;  %v3431_v36 = vpop.permute.xlu1 %648  ;;  %v1817_v37 = vsel %vm1811_vm0, %v3424_v29, inf  ;;  %v1818_v40 = vsel %vm1811_vm0, %v3426_v32, inf  ;;  %v3437_v48 = vsel %vm1811_vm0, %v3424_v29, -inf  ;;  %v3443_v51 = vsel %vm1811_vm0, %v3426_v32, -inf }
  0xbb   : > { %956 = vperm.xlu1 %2824, %v3429_v33   ;;  %v1819_v46 = vmin.f32 %v1817_v37, %v1818_v40  ;;  %v3562_v29 = vld [vmem:[%s3361_s22 + $0xa8] sm:$0xff] }
  0xbd   : > { %1820 = vmin.xlane.f32.xlu0 %v1819_v46 }
  0xbe   : > { %v3447_v54 = vpop.permute.xlu1 %652 }
  0xbf   : > { %4947 = vst [vmem:[#allocation19_spill] sm:$0xff] %v3447_v54  ;;  %966 = vperm.xlu1 %2824, %v3440_v50  }
  0xc2   : > { %v3453_v57 = vpop.permute.xlu1 %656 }
  0xc3   : > { %976 = vperm.xlu1 %2824, %v3451_v56  }
  0xc6   : > { %v3459_v59 = vpop.permute.xlu1 %660 }
  0xc7   : > { %986 = vperm.xlu1 %2824, %v3457_v58  }
  0xca   : > { %v3465_v61 = vpop.permute.xlu1 %664 }
  0xcb   : > { %996 = vperm.xlu1 %2824, %v3463_v60  }
  0xce   : > { %v3471_v63 = vpop.permute.xlu1 %668 }
  0xcf   : > { %4952 = vst [vmem:[#allocation24_spill] sm:$0xff] %v3471_v63  ;;  %1006 = vperm.xlu1 %2824, %v3469_v62   ;;  %v3581_v63 = vld [vmem:[%s3361_s22 + $0xc8] sm:$0xff] }
  0xd2   : > { %v3477_v2 = vpop.permute.xlu1 %704 }
  0xd3   : > { %2825 = vset.pattern.permute.xlu1 %v3074_v7  ;;  %1076 = vperm.xlu0 %2821, %v3381_v45   ;;  %v3494_v7 = vld [vmem:[%s3361_s22 + $0x28] sm:$0xff] }
  0xd4   : > { %1052 = vperm.xlu1 %2825, %v3475_v1   ;;  %4955 = vst [vmem:[#allocation27_spill] sm:$0xff] %v3494_v7 }
  0xd6   : > { %v3482_v3 = vpop.permute.xlu1 %708 }
  0xd7   : > { %1084 = vperm.xlu0 %2821, %v3385_v47  }
  0xd8   : > { %1060 = vperm.xlu1 %2825, %v3376_v44  }
  0xda   : > { %v3489_v9 = vpop.permute.xlu1 %712 }
  0xdb   : > { %4954 = vst [vmem:[#allocation26_spill] sm:$0xff] %v3489_v9  ;;  %1092 = vperm.xlu0 %2821, %v3392_v52   ;;  %v3509_v52 = vpop.permute.xlu0 %642 }
  0xdc   : > { %1064 = vperm.xlu1 %2825, %v3487_v8  }
  0xde   : > { %v3496_v11 = vpop.permute.xlu1 %716 }
  0xdf   : > { %4956 = vst [vmem:[#allocation28_spill] sm:$0xff] %v3496_v11  ;;  %1100 = vperm.xlu0 %2821, %v3401_v55   ;;  %v3519_v55 = vld [vmem:[%s3361_s22 + $0x58] sm:$0xff]  ;;  %v3523_v40 = vpop.permute.xlu0 %646 }
  0xe0   : > { %1072 = vperm.xlu1 %2825, %v3494_v7   ;;  %4958 = vst [vmem:[#allocation30_spill] sm:$0xff] %v3519_v55 }
  0xe2   : > { %v3505_v20 = vpop.permute.xlu1 %720 }
  0xe3   : > { %1108 = vperm.xlu0 %2821, %v3407_v0   ;;  %v3528_v0 = vld [vmem:[%s3361_s22 + $0x68] sm:$0xff]  ;;  %v3534_v6 = vpop.permute.xlu0 %650 }
  0xe4   : > { %1080 = vperm.xlu1 %2825, %v3503_v17   ;;  %4960 = vst [vmem:[#allocation32_spill] sm:$0xff] %v3528_v0  ;;  %4962 = vst [vmem:[#allocation34_spill] sm:$0xff] %v3534_v6 }
  0xe6   : > { %v3514_v25 = vpop.permute.xlu1 %724 }
  0xe7   : > { %1116 = vperm.xlu0 %2821, %v3411_v10   ;;  %v3548_v10 = vpop.permute.xlu0 %654 }
  0xe8   : > { %1088 = vperm.xlu1 %2825, %v3512_v21  }
  0xea   : > { %v3521_v37 = vpop.permute.xlu1 %728 }
  0xeb   : > { %4959 = vst [vmem:[#allocation31_spill] sm:$0xff] %v3521_v37  ;;  %1124 = vperm.xlu0 %2821, %v3418_v24  }
  0xec   : > { %1096 = vperm.xlu1 %2825, %v3519_v55  }
  0xee   : > { %v3530_v46 = vpop.permute.xlu1 %732 }
  0xef   : > { %4961 = vst [vmem:[#allocation33_spill] sm:$0xff] %v3530_v46  ;;  %1132 = vperm.xlu0 %2821, %v3429_v33   ;;  %v3553_v33 = vld [vmem:[%s3361_s22 + $0x98] sm:$0xff] }
  0xf0   : > { %1104 = vperm.xlu1 %2825, %v3528_v0   ;;  %4964 = vst [vmem:[#allocation36_spill] sm:$0xff] %v3553_v33 }
  0xf2   : > { %v3539_v4 = vpop.permute.xlu1 %768 }
  0xf3   : > { %1140 = vperm.xlu0 %2821, %v3440_v50   ;;  %v3559_v50 = vpop.permute.xlu0 %658 }
  0xf4   : > { %1112 = vperm.xlu1 %2825, %v3537_v53  }
  0xf6   : > { %v3546_v24 = vpop.permute.xlu1 %772 }
  0xf7   : > { %1148 = vperm.xlu0 %2821, %v3451_v56   ;;  %v3569_v56 = vld [vmem:[%s3361_s22 + $0xb8] sm:$0xff]  ;;  %v3573_v11 = vpop.permute.xlu0 %662 }
  0xf8   : > { %1120 = vperm.xlu1 %2825, %v3544_v5  }
  0xfa   : > { %v3555_v32 = vpop.permute.xlu1 %776 }
  0xfb   : > { %4965 = vst [vmem:[#allocation37_spill] sm:$0xff] %v3555_v32  ;;  %1156 = vperm.xlu0 %2821, %v3457_v58   ;;  %v3578_v58 = vld [vmem:[%s3361_s22 + $0xf8] sm:$0xff] }
  0xfc   : > { %1128 = vperm.xlu1 %2825, %v3553_v33  }
  0xfe   : > { %v3564_v44 = vpop.permute.xlu1 %780 }
  0xff   : > { %4966 = vst [vmem:[#allocation38_spill] sm:$0xff] %v3564_v44  ;;  %1164 = vperm.xlu0 %2821, %v3463_v60   ;;  %v3587_v60 = vpop.permute.xlu0 %666 }
 0x100   : > { %1136 = vperm.xlu1 %2825, %v3562_v29   ;;  %4967 = vst [vmem:[#allocation39_spill] sm:$0xff] %v3587_v60 }
 0x102   : > { %v3571_v46 = vpop.permute.xlu1 %784 }
 0x103   : > { %1172 = vperm.xlu0 %2821, %v3469_v62   ;;  %v3598_v62 = vld [vmem:[%s3361_s22 + $0xe8] sm:$0xff]  ;;  %v703_v39 = vpop.permute.xlu0 %702 }
 0x104   : > { %1144 = vperm.xlu1 %2825, %v3569_v56  }
 0x106   : > { %v3583_v44 = vpop.permute.xlu1 %788 }
 0x107   : > { %1176 = vperm.xlu0 %2821, %v3578_v58   ;;  %v3608_v6 = vpop.permute.xlu0 %706 }
 0x108   : > { %1152 = vperm.xlu1 %2825, %v3581_v63  }
 0x10a   : > { %v3592_v54 = vpop.permute.xlu1 %792 }
 0x10b   : > { %4968 = vst [vmem:[#allocation40_spill] sm:$0xff] %v3592_v54  ;;  %2826 = vset.pattern.permute.xlu0 %v4969_v26  ;;  %v4972_v54 = vmov 2  }
 0x10c   : > { %1160 = vperm.xlu1 %2825, %v3590_v41   ;;  %856 = vperm.xlu0 %2826, %v3475_v1  }
 0x10e   : > { %v3600_v32 = vpop.permute.xlu1 %796 }
 0x10f   : > { %4970 = vst [vmem:[#allocation41_spill] sm:$0xff] %v3600_v32  ;;  %v3615_v32 = vpop.permute.xlu0 %710 }
 0x110   : > { %1168 = vperm.xlu1 %2825, %v3598_v62   ;;  %871 = vperm.xlu0 %2826, %v3487_v8  }
 0x112   : > { %v3604_v60 = vpop.permute.xlu1 %861 }
 0x113   : > { %4971 = vst [vmem:[#allocation42_spill] sm:$0xff] %v3604_v60  ;;  %v3621_v60 = vpop.permute.xlu0 %714 }
 0x114   : > { %881 = vperm.xlu0 %2826, %v3494_v7   ;;  %2827 = vset.pattern.permute.xlu1 %v4972_v54 }
 0x116   : > { %v3610_v23 = vpop.permute.xlu1 %866 }
 0x117   : > { %4973 = vst [vmem:[#allocation43_spill] sm:$0xff] %v3610_v23  ;;  %v719_v23 = vpop.permute.xlu0 %718 }
 0x118   : > { %891 = vperm.xlu0 %2826, %v3503_v17  }
 0x11a   : > { %v3613_v37 = vpop.permute.xlu1 %876 }
 0x11b   : > { %4974 = vst [vmem:[#allocation44_spill] sm:$0xff] %v3613_v37 }
 0x11c   : > { %901 = vperm.xlu0 %2826, %v3512_v21   ;;  %v3632_v21 = vpop.permute.xlu0 %722 }
 0x11e   : > { %v3618_v9 = vpop.permute.xlu1 %886 }
 0x11f   : > { %4975 = vst [vmem:[#allocation45_spill] sm:$0xff] %v3618_v9 }
 0x120   : > { %911 = vperm.xlu0 %2826, %v3519_v55   ;;  %v3637_v55 = vpop.permute.xlu0 %726 }
 0x122   : > { %v3623_v7 = vpop.permute.xlu1 %896 }
 0x123   : > { %4976 = vst [vmem:[#allocation46_spill] sm:$0xff] %v3623_v7 }
 0x124   : > { %921 = vperm.xlu0 %2826, %v3528_v0  }
 0x126   : > { %v3626_v54 = vpop.permute.xlu1 %906 }
 0x127   : > { %4977 = vst [vmem:[#allocation47_spill] sm:$0xff] %v3626_v54  ;;  %v4981_v54 = vmax.f32 %v3437_v48, %v3443_v51 }
 0x128   : > { %931 = vperm.xlu0 %2826, %v3537_v53  }
 0x12a   : > { %v3629_v37 = vpop.permute.xlu1 %916 }
 0x12b   : > { %4978 = vst [vmem:[#allocation48_spill] sm:$0xff] %v3629_v37  ;;  %v3646_v37 = vpop.permute.xlu0 %730 }
 0x12c   : > { %941 = vperm.xlu0 %2826, %v3544_v5  }
 0x12e   : > { %v3634_v9 = vpop.permute.xlu1 %926 }
 0x12f   : > { %4979 = vst [vmem:[#allocation49_spill] sm:$0xff] %v3634_v9  ;;  %v686_v9 = vadd.f32 %v3498_v13, %v3249_v12  ;;  %v767_v0 = vpop.permute.xlu0 %766 }
 0x130   : > { %951 = vperm.xlu0 %2826, %v3553_v33  }
 0x132   : > { %v3639_v7 = vpop.permute.xlu1 %936 }
 0x133   : > { %4980 = vst [vmem:[#allocation50_spill] sm:$0xff] %v3639_v7  ;;  %v750_v7 = vadd.f32 %v703_v39, %v686_v9  ;;  %v3657_v48 = vpop.permute.xlu0 %770  ;;  %v694_v9 = vadd.f32 %v3548_v10, %v3287_v27 }
 0x134   : > { %961 = vperm.xlu0 %2826, %v3562_v29   ;;  %1815 = vmax.xlane.f32.xlu1 %v4981_v54 }
 0x135   : > { %v814_v54 = vadd.f32 %v767_v0, %v750_v7 }
 0x136   : > { %v3648_v53 = vpop.permute.xlu1 %946 }
 0x137   : > { %4982 = vst [vmem:[#allocation51_spill] sm:$0xff] %v3648_v53  ;;  %v3663_v53 = vld [vmem:[#allocation2] ss:$0 sm:$0xff]  ;;  %v3669_v13 = vpop.permute.xlu0 %774 }
 0x138   : > { %971 = vperm.xlu0 %2826, %v3569_v56   ;;  %v3667_v12 = vadd.f32 %v3663_v53, %v814_v54 }
 0x13a   : > { %v3653_v33 = vpop.permute.xlu1 %956  ;;  %vm1822_vm2 = vcmp.ge.f32.partialorder %v3667_v12, 0.0 }
 0x13b   : > { %4983 = vst [vmem:[#allocation52_spill] sm:$0xff] %v3653_v33  ;;  %v3677_v7 = vpop.permute.xlu0 %778 }
 0x13c   : > { %981 = vperm.xlu0 %2826, %v3581_v63  }
 0x13e   : > { %v3659_v51 = vpop.permute.xlu1 %966 }
 0x13f   : > { %4984 = vst [vmem:[#allocation53_spill] sm:$0xff] %v3659_v51  ;;  %v783_v54 = vpop.permute.xlu0 %782 }
 0x140   : > { %991 = vperm.xlu0 %2826, %v3590_v41  }
 0x142   : > { %v3671_v39 = vpop.permute.xlu1 %976 }
 0x143   : > { %4985 = vst [vmem:[#allocation54_spill] sm:$0xff] %v3671_v39 }
 0x144   : > { %1001 = vperm.xlu0 %2826, %v3598_v62  }
 0x145   : > { %1249 = vperm.xlu1 %2827, %v3475_v1  }
 0x146   : > { %v3679_v0 = vpop.permute.xlu1 %986 }
 0x147   : > { %4986 = vst [vmem:[#allocation55_spill] sm:$0xff] %v3679_v0 }
 0x148   : > { %1011 = vperm.xlu0 %2826, %v3578_v58  }
 0x149   : > { %1253 = vperm.xlu1 %2827, %v3366_v42   ;;  %v758_v42 = vadd.f32 %v719_v23, %v694_v9 }
 0x14a   : > { %v3683_v51 = vpop.permute.xlu1 %996 }
 0x14b   : > { %4987 = vst [vmem:[#allocation56_spill] sm:$0xff] %v3683_v51  ;;  %v822_v39 = vadd.f32 %v783_v54, %v758_v42 }
 0x14c   : > { %1682 = vperm.xlu0 %2826, %v3667_v12  }
 0x14d   : > { %1261 = vperm.xlu1 %2827, %v3487_v8   ;;  %v845_v8 = vadd.f32 %v3663_v53, %v822_v39 }
 0x14e   : > { %v3687_v33 = vpop.permute.xlu1 %1006 }
 0x14f   : > { %4988 = vst [vmem:[#allocation57_spill] sm:$0xff] %v3687_v33  ;;  %vm1830_vm1 = vcmp.ge.f32.partialorder %v845_v8, 0.0 }
 0x151   : > { %1265 = vperm.xlu1 %2827, %v3371_v43   ;;  %v787_v43 = vpop.permute.xlu0 %786 }
 0x153   : > { %v3690_v27 = vpop.permute.xlu1 %1052 }
 0x154   : > { %4989 = vst [vmem:[#allocation58_spill] sm:$0xff] %v3690_v27 }
 0x155   : > { %1273 = vperm.xlu1 %2827, %v3381_v45   ;;  %v3698_v9 = vpop.permute.xlu0 %790 }
 0x157   : > { %v3692_v10 = vpop.permute.xlu1 %1060 }
 0x158   : > { %4990 = vst [vmem:[#allocation59_spill] sm:$0xff] %v3692_v10 }
 0x159   : > { %1281 = vperm.xlu1 %2827, %v3385_v47   ;;  %v3702_v47 = vpop.permute.xlu0 %794 }
 0x15b   : > { %v3694_v23 = vpop.permute.xlu1 %1064 }
 0x15c   : > { %4991 = vst [vmem:[#allocation60_spill] sm:$0xff] %v3694_v23 }
 0x15d   : > { %2828 = vset.pattern.permute.xlu1 %v4969_v26  ;;  %v3706_v54 = vpop.permute.xlu0 %1056 }
 0x15e   : > { %1722 = vperm.xlu1 %2828, %v845_v8   ;;  %4995 = vst [vmem:[#allocation64_spill] sm:$0xff] %v3706_v54 }
 0x15f   : > { %v3696_v45 = vpop.permute.xlu1 %1072 }
 0x160   : > { %4992 = vst [vmem:[#allocation61_spill] sm:$0xff] %v3696_v45 }
 0x161   : > { %v3708_v33 = vpop.permute.xlu0 %1068 }
 0x162   : > { %4996 = vst [vmem:[#allocation65_spill] sm:$0xff] %v3708_v33 }
 0x163   : > { %v3700_v42 = vpop.permute.xlu1 %1080 }
 0x164   : > { %4993 = vst [vmem:[#allocation62_spill] sm:$0xff] %v3700_v42 }
 0x165   : > { %v1821_v0 = vpop.xlane.xlu0 %1820 }
 0x167   : > { %v3704_v39 = vpop.permute.xlu1 %1088 }
 0x168   : > { %4994 = vst [vmem:[#allocation63_spill] sm:$0xff] %v3704_v39 }
 0x169   : > { %v3714_v23 = vpop.permute.xlu0 %1076 }
 0x16a   : > { %4999 = vst [vmem:[#allocation68_spill] sm:$0xff] %v3714_v23 }
 0x16b   : > { %v3710_v51 = vpop.permute.xlu1 %1096 }
 0x16c   : > { %4997 = vst [vmem:[#allocation66_spill] sm:$0xff] %v3710_v51 }
 0x16d   : > { %v3718_v27 = vpop.permute.xlu0 %1084 }
 0x16e   : > { %5001 = vst [vmem:[#allocation70_spill] sm:$0xff] %v3718_v27 }
 0x16f   : > { %v3712_v10 = vpop.permute.xlu1 %1104 }
 0x170   : > { %4998 = vst [vmem:[#allocation67_spill] sm:$0xff] %v3712_v10 }
 0x171   : > { %v3722_v26 = vpop.permute.xlu0 %1092 }
 0x172   : > { %5003 = vst [vmem:[#allocation72_spill] sm:$0xff] %v3722_v26 }
 0x173   : > { %v3716_v45 = vpop.permute.xlu1 %1112 }
 0x174   : > { %5000 = vst [vmem:[#allocation69_spill] sm:$0xff] %v3716_v45 }
 0x175   : > { %v3726_v54 = vpop.permute.xlu0 %1100 }
 0x176   : > { %5005 = vst [vmem:[#allocation74_spill] sm:$0xff] %v3726_v54  ;;  %v687_v54 = vadd.f32 %v3413_v16, %v3253_v14  ;;  %v696_v14 = vadd.f32 %v3559_v50, %v3297_v31 }
 0x177   : > { %v3720_v42 = vpop.permute.xlu1 %1120 }
 0x178   : > { %5002 = vst [vmem:[#allocation71_spill] sm:$0xff] %v3720_v42  ;;  %v760_v50 = vadd.f32 %v3632_v21, %v696_v14  ;;  %v689_v14 = vadd.f32 %v3420_v28, %v3263_v18  ;;  %v690_v18 = vadd.f32 %v3523_v40, %v3267_v19 }
 0x179   : > { %v3730_v51 = vpop.permute.xlu0 %1108 }
 0x17a   : > { %5007 = vst [vmem:[#allocation76_spill] sm:$0xff] %v3730_v51  ;;  %v695_v51 = vadd.f32 %v3453_v57, %v3293_v30  ;;  %v754_v19 = vadd.f32 %v3615_v32, %v690_v18 }
 0x17b   : > { %v3724_v39 = vpop.permute.xlu1 %1128 }
 0x17c   : > { %5004 = vst [vmem:[#allocation73_spill] sm:$0xff] %v3724_v39 }
 0x17d   : > { %v3734_v10 = vpop.permute.xlu0 %1116 }
 0x17e   : > { %5008 = vst [vmem:[#allocation77_spill] sm:$0xff] %v3734_v10  ;;  %v751_v10 = vadd.f32 %v3477_v2, %v687_v54 }
 0x17f   : > { %v3728_v33 = vpop.permute.xlu1 %1136 }
 0x180   : > { %5006 = vst [vmem:[#allocation75_spill] sm:$0xff] %v3728_v33  ;;  %v3753_v33 = vrot.slane %v1821_v0, %v3389_v49  ;;  %v815_v16 = vadd.f32 %v3539_v4, %v751_v10 }
 0x181   : > { %v3738_v45 = vpop.permute.xlu0 %1124 }
 0x182   : > { %5009 = vst [vmem:[#allocation78_spill] sm:$0xff] %v3738_v45  ;;  %v759_v45 = vadd.f32 %v3505_v20, %v695_v51  ;;  %v1870_v20 = vmul.f32 %v3753_v33, %v845_v8  ;;  %v1862_v0 = vmul.f32 %v3753_v33, %v3667_v12 }
 0x183   : > { %v3732_v1 = vpop.permute.xlu1 %1144 }
 0x184   : > { %v823_v30 = vadd.f32 %v3571_v46, %v759_v45  ;;  %v824_v45 = vadd.f32 %v787_v43, %v760_v50  ;;  %v818_v50 = vadd.f32 %v3669_v13, %v754_v19  ;;  %v699_v13 = vadd.f32 %v3465_v61, %v3313_v38  ;;  %v5023_v61 = vld [vmem:[#allocation37_spill] sm:$0xff] }
 0x185   : > { %v3742_v42 = vpop.permute.xlu0 %1132 }
 0x186   : > { %5011 = vst [vmem:[#allocation80_spill] sm:$0xff] %v3742_v42  ;;  %v846_v46 = vadd.f32 %v3663_v53, %v823_v30 }
 0x187   : > { %v3736_v23 = vpop.permute.xlu1 %1152 }
 0x188   : > { %v1871_v54 = vmul.f32 %v3753_v33, %v846_v46  ;;  %vm1831_vm3 = vcmp.ge.f32.partialorder %v846_v46, 0.0 }
 0x189   : > { %v3746_v39 = vpop.permute.xlu0 %1140 }
 0x18a   : > { %5012 = vst [vmem:[#allocation81_spill] sm:$0xff] %v3746_v39  ;;  %v688_v39 = vadd.f32 %v3509_v52, %v3257_v15  ;;  %v838_v52 = vadd.f32 %v3663_v53, %v815_v16  ;;  %v697_v16 = vadd.f32 %v3459_v59, %v3303_v34  ;;  %v698_v34 = vadd.f32 %v3573_v11, %v3307_v35 }
 0x18b   : > { %v3740_v27 = vpop.permute.xlu1 %1160 }
 0x18c   : > { %5010 = vst [vmem:[#allocation79_spill] sm:$0xff] %v3740_v27  ;;  %v752_v4 = vadd.f32 %v3608_v6, %v688_v39  ;;  %v1863_v6 = vmul.f32 %v3753_v33, %v838_v52  ;;  %vm1823_vm4 = vcmp.ge.f32.partialorder %v838_v52, 0.0  ;;  %v762_v35 = vadd.f32 %v3637_v55, %v698_v34 }
 0x18d   : > { %v3766_v57 = vpop.permute.xlu0 %1148 }
 0x18e   : > { %5013 = vst [vmem:[#allocation82_spill] sm:$0xff] %v3766_v57  ;;  %v5064_v57 = vld [vmem:[#allocation32_spill] sm:$0xff] }
 0x18f   : > { %v3744_v26 = vpop.permute.xlu1 %1168 }
 0x1c1   : > { %v1816_v27 = vpop.xlane.xlu1 %1815 }
 0x1c2   : > { %v3758_v42 = vrot.slane %v1816_v27, %v3389_v49  ;;  %v3779_v27 = vpop.permute.xlu0 %1156 }
 0x1c3   : > { %5014 = vst [vmem:[#allocation83_spill] sm:$0xff] %v3779_v27  ;;  %v5059_v27 = vld [vmem:[#allocation29_spill] sm:$0xff] }
 0x1c4   : > { %v1850_v2 = vmul.f32 %v3758_v42, %v845_v8  ;;  %v1842_v51 = vmul.f32 %v3758_v42, %v3667_v12  ;;  %v1851_v10 = vmul.f32 %v3758_v42, %v846_v46  ;;  %v1843_v8 = vmul.f32 %v3758_v42, %v838_v52 }
 0x1c5   : > { %v816_v12 = vadd.f32 %v3657_v48, %v752_v4  ;;  %v847_v48 = vadd.f32 %v3663_v53, %v824_v45 }
 0x1c6   : > { %v1886_v15 = vsel %vm1830_vm1, %v1850_v2, %v1870_v20  ;;  %v1878_v31 = vsel %vm1822_vm2, %v1842_v51, %v1862_v0  ;;  %v1887_v21 = vsel %vm1831_vm3, %v1851_v10, %v1871_v54  ;;  %v1879_v39 = vsel %vm1823_vm4, %v1843_v8, %v1863_v6  ;;  %v3792_v43 = vpop.permute.xlu0 %1164  ;;  %v5017_v54 = vld [vmem:[#allocation26_spill] sm:$0xff] }
 0x1c7   : > { %1936 = vperm.xlu0 %2826, %v1886_v15   ;;  %1896 = vperm.xlu1 %2828, %v1878_v31   ;;  %v839_v30 = vadd.f32 %v3663_v53, %v816_v12  ;;  %5015 = vst [vmem:[#allocation84_spill] sm:$0xff] %v3792_v43  ;;  %v753_v2 = vadd.f32 %v3482_v3, %v689_v14  ;;  %vm1832_vm5 = vcmp.ge.f32.partialorder %v847_v48, 0.0 }
 0x1c8   : > { %v761_v20 = vadd.f32 %v3514_v25, %v697_v16  ;;  %v1852_v51 = vmul.f32 %v3758_v42, %v847_v48  ;;  %v1872_v3 = vmul.f32 %v3753_v33, %v847_v48  ;;  %v691_v12 = vadd.f32 %v3431_v36, %v3273_v22  ;;  %v5021_v36 = vld [vmem:[#allocation10_spill] sm:$0xff] }
 0x1c9   : > { %v1844_v0 = vmul.f32 %v3758_v42, %v839_v30  ;;  %v817_v28 = vadd.f32 %v3546_v24, %v753_v2  ;;  %v1864_v25 = vmul.f32 %v3753_v33, %v839_v30  ;;  %vm1824_vm6 = vcmp.ge.f32.partialorder %v839_v30, 0.0  ;;  %v5020_v2 = vld [vmem:[#allocation34_spill] sm:$0xff] }
 0x1ca   : > { %v825_v59 = vadd.f32 %v3583_v44, %v761_v20  ;;  %v3806_v15 = vpop.permute.xlu0 %1172  ;;  %v1888_v31 = vsel %vm1832_vm5, %v1852_v51, %v1872_v3  ;;  %v755_v6 = vadd.f32 %v5017_v54, %v691_v12  ;;  %v5022_v20 = vld [vmem:[#allocation39_spill] sm:$0xff] }
 0x1cb   : > { %1727 = vperm.xlu0 %2826, %v846_v46   ;;  %1687 = vperm.xlu1 %2828, %v838_v52   ;;  %5016 = vst [vmem:[#allocation85_spill] sm:$0xff] %v3806_v15  ;;  %v1880_v4 = vsel %vm1824_vm6, %v1844_v0, %v1864_v25  ;;  %v840_v24 = vadd.f32 %v3663_v53, %v817_v28  ;;  %v5024_v0 = vld [vmem:[#allocation40_spill] sm:$0xff]  ;;  %v5029_v12 = vld [vmem:[#allocation11_spill] sm:$0xff]  ;;  %v5054_v15 = vld [vmem:[#allocation14_spill] sm:$0xff] }
 0x1cc   : > { %v848_v44 = vadd.f32 %v3663_v53, %v825_v59  ;;  %v826_v52 = vadd.f32 %v3698_v9, %v762_v35  ;;  %v841_v9 = vadd.f32 %v3663_v53, %v818_v50  ;;  %v700_v38 = vadd.f32 %v5022_v20, %v5021_v36 }
 0x1cd   : > { %v1845_v40 = vmul.f32 %v3758_v42, %v840_v24  ;;  %v1865_v55 = vmul.f32 %v3753_v33, %v840_v24  ;;  %vm1825_vm8 = vcmp.ge.f32.partialorder %v840_v24, 0.0  ;;  %v819_v51 = vadd.f32 %v5023_v61, %v755_v6  ;;  %v5032_v6 = vld [vmem:[#allocation33_spill] sm:$0xff] }
 0x1ce   : > { %v1853_v11 = vmul.f32 %v3758_v42, %v848_v44  ;;  %v3816_v46 = vpop.permute.xlu0 %1176  ;;  %v1873_v32 = vmul.f32 %v3753_v33, %v848_v44  ;;  %vm1833_vm7 = vcmp.ge.f32.partialorder %v848_v44, 0.0  ;;  %v849_v45 = vadd.f32 %v3663_v53, %v826_v52 }
 0x1cf   : > { %1941 = vperm.xlu0 %2826, %v1887_v21   ;;  %1901 = vperm.xlu1 %2828, %v1879_v39   ;;  %v1881_v8 = vsel %vm1825_vm8, %v1845_v40, %v1865_v55  ;;  %v5018_v21 = vld [vmem:[#allocation31_spill] sm:$0xff]  ;;  %v1866_v28 = vmul.f32 %v3753_v33, %v841_v9  ;;  %vm1826_vm10 = vcmp.ge.f32.partialorder %v841_v9, 0.0  ;;  %v5027_v55 = vld [vmem:[#allocation9_spill] sm:$0xff] }
 0x1d0   : > { %v1889_v10 = vsel %vm1833_vm7, %v1853_v11, %v1873_v32  ;;  %v763_v39 = vadd.f32 %v5018_v21, %v699_v13  ;;  %v1854_v16 = vmul.f32 %v3758_v42, %v849_v45  ;;  %v1874_v34 = vmul.f32 %v3753_v33, %v849_v45  ;;  %v5030_v13 = vld [vmem:[#allocation24_spill] sm:$0xff] }
 0x1d1   : > { %vm1834_vm9 = vcmp.ge.f32.partialorder %v849_v45, 0.0 }
 0x1d2   : > { %v3828_v14 = vpop.permute.xlu0 %856  ;;  %v827_v18 = vadd.f32 %v5024_v0, %v763_v39  ;;  %v1890_v59 = vsel %vm1834_vm9, %v1854_v16, %v1874_v34 }
 0x1d3   : > { %1732 = vperm.xlu0 %2826, %v847_v48   ;;  %1692 = vperm.xlu1 %2828, %v839_v30   ;;  %v1846_v30 = vmul.f32 %v3758_v42, %v841_v9  ;;  %v5019_v48 = vld [vmem:[#allocation8_spill] sm:$0xff] }
 0x1d4   : > { %v692_v22 = vadd.f32 %v5020_v2, %v5019_v48  ;;  %v850_v19 = vadd.f32 %v3663_v53, %v827_v18  ;;  %v5034_v2 = vld [vmem:[#allocation41_spill] sm:$0xff] }
 0x1d5   : > { %v1882_v3 = vsel %vm1826_vm10, %v1846_v30, %v1866_v28  ;;  %v5033_v30 = vld [vmem:[#allocation38_spill] sm:$0xff] }
 0x1d6   : > { %v756_v25 = vadd.f32 %v3621_v60, %v692_v22  ;;  %v3844_v35 = vpop.permute.xlu0 %871  ;;  %v1875_v60 = vmul.f32 %v3753_v33, %v850_v19  ;;  %vm1835_vm11 = vcmp.ge.f32.partialorder %v850_v19, 0.0 }
 0x1d7   : > { %1946 = vperm.xlu0 %2826, %v1888_v31   ;;  %1906 = vperm.xlu1 %2828, %v1880_v4   ;;  %v764_v31 = vadd.f32 %v3646_v37, %v700_v38  ;;  %v842_v4 = vadd.f32 %v3663_v53, %v819_v51  ;;  %5025 = vst [vmem:[#allocation26_spill] sm:$0xff] %v3844_v35 }
 0x1d8   : > { %v820_v11 = vadd.f32 %v3677_v7, %v756_v25  ;;  %v701_v7 = vadd.f32 %v5030_v13, %v5029_v12 }
 0x1d9   : > { %v828_v40 = vadd.f32 %v3702_v47, %v764_v31  ;;  %v1867_v37 = vmul.f32 %v3753_v33, %v842_v4  ;;  %vm1827_vm12 = vcmp.ge.f32.partialorder %v842_v4, 0.0 }
 0x1da   : > { %v3852_v50 = vpop.permute.xlu0 %881  ;;  %v843_v47 = vadd.f32 %v3663_v53, %v820_v11  ;;  %v765_v21 = vadd.f32 %v5032_v6, %v701_v7 }
 0x1db   : > { %1737 = vperm.xlu0 %2826, %v848_v44   ;;  %1697 = vperm.xlu1 %2828, %v840_v24   ;;  %v1855_v24 = vmul.f32 %v3758_v42, %v850_v19  ;;  %v1847_v44 = vmul.f32 %v3758_v42, %v842_v4  ;;  %5026 = vst [vmem:[#allocation31_spill] sm:$0xff] %v3852_v50  ;;  %v5067_v50 = vld [vmem:[#allocation25_spill] sm:$0xff] }
 0x1dc   : > { %v1848_v16 = vmul.f32 %v3758_v42, %v843_v47  ;;  %v829_v22 = vadd.f32 %v5034_v2, %v765_v21  ;;  %v1868_v38 = vmul.f32 %v3753_v33, %v843_v47  ;;  %vm1828_vm14 = vcmp.ge.f32.partialorder %v843_v47, 0.0  ;;  %v5052_v21 = vld [vmem:[#allocation16_spill] sm:$0xff] }
 0x1dd   : > { %v1891_v52 = vsel %vm1835_vm11, %v1855_v24, %v1875_v60  ;;  %v1883_v32 = vsel %vm1827_vm12, %v1847_v44, %v1867_v37  ;;  %v5039_v24 = vld [vmem:[#allocation12_spill] sm:$0xff]  ;;  %v5041_v44 = vld [vmem:[#allocation27_spill] sm:$0xff]  ;;  %v3895_v37 = vpop.permute.xlu1 %1249 }
 0x1de   : > { %v3866_v36 = vpop.permute.xlu0 %891  ;;  %v1884_v51 = vsel %vm1828_vm14, %v1848_v16, %v1868_v38  ;;  %v852_v18 = vadd.f32 %v3663_v53, %v829_v22 }
 0x1df   : > { %1951 = vperm.xlu0 %2826, %v1889_v10   ;;  %1911 = vperm.xlu1 %2828, %v1881_v8   ;;  %v5028_v10 = vld [vmem:[#allocation19_spill] sm:$0xff]  ;;  %5035 = vst [vmem:[#allocation8_spill] sm:$0xff] %v3866_v36 }
 0x1e0   : > { %v693_v8 = vadd.f32 %v5028_v10, %v5027_v55  ;;  %v1857_v28 = vmul.f32 %v3758_v42, %v852_v18  ;;  %vm1837_vm15 = vcmp.ge.f32.partialorder %v852_v18, 0.0  ;;  %5045 = vst [vmem:[#allocation19_spill] sm:$0xff] %v3895_v37  ;;  %v2942_v37 = vld [vmem:[%s3361_s22 + $0x18] sm:$0xff] }
 0x1e2   : > { %v3872_v34 = vpop.permute.xlu0 %901 }
 0x1e3   : > { %1742 = vperm.xlu0 %2826, %v849_v45   ;;  %1702 = vperm.xlu1 %2828, %v841_v9   ;;  %v851_v9 = vadd.f32 %v3663_v53, %v828_v40  ;;  %v5031_v45 = vld [vmem:[#allocation28_spill] sm:$0xff]  ;;  %5036 = vst [vmem:[#allocation34_spill] sm:$0xff] %v3872_v34 }
 0x1e4   : > { %v757_v54 = vadd.f32 %v5031_v45, %v693_v8  ;;  %v4038_v34 = vld [vmem:[%s3361_s22 + $0x60] sm:$0xff] }
 0x1e5   : > { %v1856_v39 = vmul.f32 %v3758_v42, %v851_v9  ;;  %v1876_v20 = vmul.f32 %v3753_v33, %v851_v9  ;;  %vm1836_vm13 = vcmp.ge.f32.partialorder %v851_v9, 0.0 }
 0x1e6   : > { %v821_v48 = vadd.f32 %v5033_v30, %v757_v54  ;;  %v5051_v54 = vld [vmem:[#allocation15_spill] sm:$0xff] }
 0x1e7   : > { %1956 = vperm.xlu0 %2826, %v1890_v59   ;;  %1916 = vperm.xlu1 %2828, %v1882_v3   ;;  %v1892_v61 = vsel %vm1836_vm13, %v1856_v39, %v1876_v20  ;;  %v1877_v3 = vmul.f32 %v3753_v33, %v852_v18  ;;  %v3919_v6 = vrot.slane %v5051_v54, %v3389_v49 }
 0x1e8   : > { %v844_v0 = vadd.f32 %v3663_v53, %v821_v48  ;;  %v5038_v53 = vmov 2   ;;  %v3923_v39 = vrot.slane %v5052_v21, %v3389_v49 }
 0x1e9   : > { %v1893_v31 = vsel %vm1837_vm15, %v1857_v28, %v1877_v3 }
 0x1ea   : > { %v1849_v59 = vmul.f32 %v3758_v42, %v844_v0  ;;  %v1869_v25 = vmul.f32 %v3753_v33, %v844_v0  ;;  %vm1829_vm0 = vcmp.ge.f32.partialorder %v844_v0, 0.0 }
 0x1eb   : > { %1747 = vperm.xlu0 %2826, %v850_v19   ;;  %1707 = vperm.xlu1 %2828, %v842_v4   ;;  %v3878_v19 = vpop.permute.xlu0 %911 }
 0x1ec   : > { %v1885_v4 = vsel %vm1829_vm0, %v1849_v59, %v1869_v25  ;;  %5037 = vst [vmem:[#allocation10_spill] sm:$0xff] %v3878_v19  ;;  %v5057_v19 = vld [vmem:[#allocation18_spill] sm:$0xff] }
 0x1ef   : > { %1961 = vperm.xlu0 %2826, %v1891_v52   ;;  %1921 = vperm.xlu1 %2828, %v1883_v32   ;;  %v3883_v42 = vpop.permute.xlu0 %921  ;;  %v3899_v32 = vpop.permute.xlu1 %1253 }
 0x1f0   : > { %5040 = vst [vmem:[#allocation39_spill] sm:$0xff] %v3883_v42  ;;  %5046 = vst [vmem:[#allocation11_spill] sm:$0xff] %v3899_v32  ;;  %v5056_v42 = vld [vmem:[#allocation36_spill] sm:$0xff] }
 0x1f3   : > { %1752 = vperm.xlu0 %2826, %v851_v9   ;;  %1712 = vperm.xlu1 %2828, %v843_v47   ;;  %v3886_v11 = vpop.permute.xlu0 %931  ;;  %v3903_v10 = vpop.permute.xlu1 %1261 }
 0x1f4   : > { %5042 = vst [vmem:[#allocation37_spill] sm:$0xff] %v3886_v11  ;;  %5047 = vst [vmem:[#allocation24_spill] sm:$0xff] %v3903_v10 }
 0x1f7   : > { %1966 = vperm.xlu0 %2826, %v1892_v61   ;;  %1926 = vperm.xlu1 %2828, %v1884_v51   ;;  %v3889_v33 = vpop.permute.xlu0 %941  ;;  %v3907_v12 = vpop.permute.xlu1 %1265 }
 0x1f8   : > { %5048 = vst [vmem:[#allocation28_spill] sm:$0xff] %v3907_v12 }
 0x1fb   : > { %1757 = vperm.xlu0 %2826, %v852_v18   ;;  %1717 = vperm.xlu1 %2828, %v844_v0   ;;  %v3891_v40 = vpop.permute.xlu0 %951  ;;  %v3911_v13 = vpop.permute.xlu1 %1273 }
 0x1fc   : > { %5043 = vst [vmem:[#allocation40_spill] sm:$0xff] %v3891_v40  ;;  %5049 = vst [vmem:[#allocation33_spill] sm:$0xff] %v3911_v13  ;;  %v5066_v13 = vld [vmem:[#allocation35_spill] sm:$0xff]  ;;  %v2940_v40 = vld [vmem:[%s3361_s22 + $0xf0] sm:$0xff] }
 0x1ff   : > { %1971 = vperm.xlu0 %2826, %v1893_v31   ;;  %1931 = vperm.xlu1 %2828, %v1885_v4   ;;  %v3893_v60 = vpop.permute.xlu0 %961  ;;  %v3915_v47 = vpop.permute.xlu1 %1281 }
 0x200   : > { %5044 = vst [vmem:[#allocation9_spill] sm:$0xff] %v3893_v60  ;;  %5050 = vst [vmem:[#allocation38_spill] sm:$0xff] %v3915_v47 }
 0x203   : > { %2829 = vset.pattern.permute.xlu0 %v5038_v53  ;;  %2830 = vset.pattern.permute.xlu1 %v5038_v53  ;;  %v3897_v52 = vpop.permute.xlu0 %971  ;;  %v1723_v45 = vpop.permute.xlu1 %1722 }
 0x204   : > { %1257 = vperm.xlu0 %2829, %v5039_v24   ;;  %v1795_v48 = vmul.f32 %v3919_v6, %v1723_v45  ;;  %v1796_v2 = vmul.f32 %v3923_v39, %v1723_v45 }
 0x207   : > { %v3901_v55 = vpop.permute.xlu0 %981 }
 0x208   : > { %1269 = vperm.xlu0 %2829, %v5041_v44  }
 0x20b   : > { %v3905_v8 = vpop.permute.xlu0 %991 }
 0x20c   : > { %1277 = vperm.xlu0 %2829, %v3503_v17  }
 0x20f   : > { %v3909_v17 = vpop.permute.xlu0 %1001 }
 0x213   : > { %v3913_v7 = vpop.permute.xlu0 %1011 }
 0x217   : > { %v1683_v9 = vpop.permute.xlu0 %1682 }
 0x218   : > { %v1779_v16 = vmul.f32 %v3919_v6, %v1683_v9  ;;  %v1780_v30 = vmul.f32 %v3923_v39, %v1683_v9 }
 0x246   : > { %v1937_v22 = vpop.permute.xlu0 %1936  ;;  %v1897_v20 = vpop.permute.xlu1 %1896 }
 0x247   : > { %v1990_v38 = vsub.f32 %v1795_v48, %v1937_v22  ;;  %v1991_v61 = vsub.f32 %v1796_v2, %v1937_v22  ;;  %v1974_v51 = vsub.f32 %v1779_v16, %v1897_v20  ;;  %v1975_v0 = vsub.f32 %v1780_v30, %v1897_v20 }
 0x249   : > { %v2038_v18 = vmul.f32 1.442695, %v1990_v38  ;;  %v2040_v28 = vmul.f32 1.442695, %v1991_v61  ;;  %v2006_v59 = vmul.f32 1.442695, %v1974_v51 }
 0x24a   : > { %v2008_v3 = vmul.f32 1.442695, %v1975_v0  ;;  %v1728_v49 = vpop.permute.xlu0 %1727  ;;  %v1688_v25 = vpop.permute.xlu1 %1687 }
 0x24b   : > { %2834 = vpow2.f32 %v2038_v18  ;;  %v1797_v31 = vmul.f32 %v3919_v6, %v1728_v49  ;;  %v1798_v4 = vmul.f32 %v3923_v39, %v1728_v49  ;;  %v1781_v53 = vmul.f32 %v3919_v6, %v1688_v25 }
 0x24c   : > { %2836 = vpow2.f32 %v2040_v28  ;;  %v1782_v24 = vmul.f32 %v3923_v39, %v1688_v25 }
 0x24d   : > { %2838 = vpow2.f32 %v2006_v59 }
 0x24e   : > { %2840 = vpow2.f32 %v2008_v3  ;;  %v1942_v44 = vpop.permute.xlu0 %1941  ;;  %v1902_v9 = vpop.permute.xlu1 %1901 }
 0x24f   : > { %v1992_v45 = vsub.f32 %v1797_v31, %v1942_v44  ;;  %v1993_v54 = vsub.f32 %v1798_v4, %v1942_v44  ;;  %v1976_v21 = vsub.f32 %v1781_v53, %v1902_v9  ;;  %v1977_v16 = vsub.f32 %v1782_v24, %v1902_v9 }
 0x251   : > { %v2042_v30 = vmul.f32 1.442695, %v1992_v45  ;;  %v2044_v48 = vmul.f32 1.442695, %v1993_v54  ;;  %v2010_v2 = vmul.f32 1.442695, %v1976_v21 }
 0x252   : > { %v2012_v22 = vmul.f32 1.442695, %v1977_v16  ;;  %v3933_v20 = vpop.permute.xlu0 %1732 }
 0x253   : > { %2842 = vpow2.f32 %v2042_v30 }
 0x254   : > { %2844 = vpow2.f32 %v2044_v48 }
 0x255   : > { %v3935_v38 = vpop.eup %2834  ;;  %2846 = vpow2.f32 %v2010_v2 }
 0x256   : > { %v3937_v61 = vpop.eup %2836  ;;  %2848 = vpow2.f32 %v2012_v22  ;;  %v3939_v51 = vpop.permute.xlu0 %1946 }
 0x257   : > { %v3941_v0 = vpop.eup %2838  ;;  %v2094_v28 = vadd.f32 %v3937_v61, %v3935_v38 }
 0x258   : > { %v3943_v18 = vpop.eup %2840 }
 0x259   : > { %v2070_v59 = vadd.f32 %v3943_v18, %v3941_v0  ;;  %2095 = vadd.xlane.f32.xlu0 %v2094_v28 }
 0x25a   : > { %v3949_v3 = vpop.permute.xlu0 %1737 }
 0x25b   : > { %2071 = vadd.xlane.f32.xlu1 %v2070_v59  ;;  %v4027_v59 = vld [vmem:[%s3361_s22 + $0x50] sm:$0xff] }
 0x25d   : > { %v3951_v49 = vpop.eup %2842 }
 0x25e   : > { %v3953_v25 = vpop.eup %2844  ;;  %v3955_v31 = vpop.permute.xlu0 %1951 }
 0x25f   : > { %v3957_v4 = vpop.eup %2846  ;;  %v2097_v24 = vadd.f32 %v3953_v25, %v3951_v49 }
 0x260   : > { %v3959_v53 = vpop.eup %2848 }
 0x261   : > { %v2073_v44 = vadd.f32 %v3959_v53, %v3957_v4  ;;  %2098 = vadd.xlane.f32.xlu0 %v2097_v24 }
 0x262   : > { %v1743_v9 = vpop.permute.xlu0 %1742 }
 0x263   : > { %2074 = vadd.xlane.f32.xlu1 %v2073_v44  ;;  %v3966_v45 = vmul.f32 %v3919_v6, %v1743_v9  ;;  %v3969_v54 = vmul.f32 %v3923_v39, %v1743_v9  ;;  %v5053_v9 = vld [vmem:[#allocation13_spill] sm:$0xff] }
 0x266   : > { %v3971_v21 = vpop.permute.xlu0 %1956 }
 0x26a   : > { %v1748_v48 = vpop.permute.xlu0 %1747 }
 0x26b   : > { %v3978_v2 = vmul.f32 %v3919_v6, %v1748_v48  ;;  %v3981_v22 = vmul.f32 %v3923_v39, %v1748_v48 }
 0x26e   : > { %v3983_v28 = vpop.permute.xlu0 %1961 }
 0x272   : > { %v1753_v44 = vpop.permute.xlu0 %1752 }
 0x273   : > { %v3991_v30 = vmul.f32 %v3919_v6, %v1753_v44  ;;  %v3994_v16 = vmul.f32 %v3923_v39, %v1753_v44 }
 0x274   : > { %1313 = vperm.xlu1 %2830, %v5053_v9   ;;  %v5055_v9 = vld [vmem:[#allocation17_spill] sm:$0xff] }
 0x276   : > { %v3996_v11 = vpop.permute.xlu0 %1966 }
 0x277   : > { %1317 = vperm.xlu0 %2829, %v3544_v5  }
 0x278   : > { %1321 = vperm.xlu1 %2830, %v5054_v15   ;;  %v5062_v15 = vld [vmem:[#allocation22_spill] sm:$0xff] }
 0x27a   : > { %v1758_v24 = vpop.permute.xlu0 %1757 }
 0x27b   : > { %1325 = vperm.xlu0 %2829, %v5056_v42   ;;  %v4007_v44 = vmul.f32 %v3919_v6, %v1758_v24  ;;  %v4010_v43 = vmul.f32 %v3923_v39, %v1758_v24  ;;  %v5060_v24 = vld [vmem:[#allocation21_spill] sm:$0xff] }
 0x27c   : > { %1329 = vperm.xlu1 %2830, %v5055_v9   ;;  %v5058_v9 = vld [vmem:[#allocation20_spill] sm:$0xff] }
 0x27e   : > { %v4012_v48 = vpop.permute.xlu0 %1971 }
 0x27f   : > { %1333 = vperm.xlu0 %2829, %v3562_v29   ;;  %v1693_v29 = vpop.permute.xlu1 %1692 }
 0x280   : > { %1337 = vperm.xlu1 %2830, %v5057_v19   ;;  %v5061_v19 = vld [vmem:[#allocation30_spill] sm:$0xff] }
 0x283   : > { %1341 = vperm.xlu0 %2829, %v3569_v56   ;;  %v1907_v56 = vpop.permute.xlu1 %1906 }
 0x284   : > { %1345 = vperm.xlu1 %2830, %v5058_v9   ;;  %v1784_v9 = vmul.f32 %v3923_v39, %v1693_v29 }
 0x286   : > { %v1979_v47 = vsub.f32 %v1784_v9, %v1907_v56 }
 0x287   : > { %1349 = vperm.xlu0 %2829, %v3581_v63  }
 0x288   : > { %1285 = vperm.xlu1 %2830, %v5059_v27   ;;  %v5063_v27 = vmov 3  }
 0x28b   : > { %1353 = vperm.xlu0 %2829, %v5060_v24  }
 0x28c   : > { %1357 = vperm.xlu1 %2830, %v3590_v41   ;;  %v1783_v41 = vmul.f32 %v3919_v6, %v1693_v29 }
 0x28e   : > { %v1978_v24 = vsub.f32 %v1783_v41, %v1907_v56  ;;  %v4052_v41 = vpop.permute.xlu1 %1697 }
 0x28f   : > { %1293 = vperm.xlu0 %2829, %v5061_v19  }
 0x290   : > { %1289 = vperm.xlu1 %2830, %v4027_v59   ;;  %v2014_v19 = vmul.f32 1.442695, %v1978_v24  ;;  %v1799_v24 = vmul.f32 %v3919_v6, %v3933_v20 }
 0x292   : > { %2850 = vpow2.f32 %v2014_v19  ;;  %v4057_v9 = vpop.permute.xlu1 %1911  ;;  %v1994_v19 = vsub.f32 %v1799_v24, %v3939_v51 }
 0x293   : > { %1373 = vperm.xlu0 %2829, %v3578_v58   ;;  %v5065_v58 = vld [vmem:[#allocation23_spill] sm:$0xff] }
 0x294   : > { %1361 = vperm.xlu1 %2830, %v5062_v15   ;;  %v2016_v15 = vmul.f32 1.442695, %v1979_v47 }
 0x296   : > { %2852 = vpow2.f32 %v2016_v15 }
 0x297   : > { %2831 = vset.pattern.permute.xlu0 %v5063_v27 }
 0x298   : > { %1365 = vperm.xlu1 %2830, %v3598_v62   ;;  %v4044_v62 = vld [vmem:[%s3361_s22 + $0x70] sm:$0xff] }
 0x29c   : > { %1297 = vperm.xlu1 %2830, %v4038_v34   ;;  %v4048_v29 = vpop.eup %2850 }
 0x2a0   : > { %1301 = vperm.xlu1 %2830, %v5064_v57   ;;  %v4050_v56 = vpop.eup %2852 }
 0x2a1   : > { %v2076_v47 = vadd.f32 %v4050_v56, %v4048_v29 }
 0x2a4   : > { %1369 = vperm.xlu1 %2830, %v5065_v58   ;;  %v4065_v58 = vpop.permute.xlu1 %1702 }
 0x2a8   : > { %1305 = vperm.xlu1 %2830, %v4044_v62  }
 0x2ac   : > { %1309 = vperm.xlu1 %2830, %v5066_v13   ;;  %v1800_v13 = vmul.f32 %v3923_v39, %v3933_v20 }
 0x2ae   : > { %v1995_v15 = vsub.f32 %v1800_v13, %v3939_v51  ;;  %v2933_v51 = vld [vmem:[%s3361_s22 + $0x10] sm:$0xff] }
 0x2b0   : > { %2832 = vset.pattern.permute.xlu1 %v5063_v27  ;;  %v2046_v27 = vmul.f32 1.442695, %v1994_v19  ;;  %v2048_v36 = vmul.f32 1.442695, %v1995_v15  ;;  %v2934_v19 = vld [vmem:[%s3361_s22 + $0x20] sm:$0xff]  ;;  %v4083_v15 = vpop.permute.xlu0 %1257 }
 0x2b1   : > { %5070 = vst [vmem:[#allocation27_spill] sm:$0xff] %v4083_v15 }
 0x2b2   : > { %2077 = vadd.xlane.f32.xlu0 %v2076_v47  ;;  %2854 = vpow2.f32 %v2046_v27  ;;  %v4067_v47 = vpop.permute.xlu1 %1916 }
 0x2b3   : > { %2856 = vpow2.f32 %v2048_v36 }
 0x2b4   : > { %v4088_v10 = vpop.permute.xlu0 %1269 }
 0x2b5   : > { %5071 = vst [vmem:[#allocation15_spill] sm:$0xff] %v4088_v10  ;;  %v2939_v10 = vld [vmem:[%s3361_s22 + $0x8] sm:$0xff] }
 0x2b6   : > { %v1708_v12 = vpop.permute.xlu1 %1707 }
 0x2ba   : > { %v4074_v24 = vpop.permute.xlu1 %1921 }
 0x2bc   : > { %v4070_v60 = vpop.eup %2854 }
 0x2bd   : > { %5068 = vst [vmem:[#allocation41_spill] sm:$0xff] %v4070_v60  ;;  %v4072_v20 = vpop.eup %2856 }
 0x2be   : > { %5069 = vst [vmem:[#allocation12_spill] sm:$0xff] %v4072_v20  ;;  %v2100_v13 = vadd.f32 %v4072_v20, %v4070_v60  ;;  %v4080_v36 = vpop.permute.xlu1 %1712  ;;  %v1790_v60 = vmul.f32 %v3923_v39, %v1708_v12 }
 0x2c2   : > { %v4085_v27 = vpop.permute.xlu1 %1926 }
 0x2c6   : > { %v4091_v35 = vpop.permute.xlu1 %1717 }
 0x2c8   : > { %1446 = vperm.xlu0 %2831, %v5067_v50   ;;  %v2935_v50 = vld [vmem:[%s3361_s22 + $0x30] sm:$0xff] }
 0x2ca   : > { %v4097_v15 = vpop.permute.xlu1 %1931 }
 0x2cc   : > { %1454 = vperm.xlu0 %2831, %v2933_v51   ;;  %v2936_v51 = vld [vmem:[%s3361_s22 + $0xd0] sm:$0xff] }
 0x2d0   : > { %2101 = vadd.xlane.f32.xlu1 %v2100_v13  ;;  %1462 = vperm.xlu0 %2831, %v2934_v19   ;;  %v2937_v13 = vld [vmem:[%s3361_s22 + $0x80] sm:$0xff] }
 0x2d1   : > { %v2938_v19 = vld [vmem:[%s3361_s22 + $0xe0] sm:$0xff] }
 0x2d4   : > { %1470 = vperm.xlu0 %2831, %v2935_v50   ;;  %v4095_v50 = vpop.permute.xlu0 %1277 }
 0x2d5   : > { %5072 = vst [vmem:[#allocation16_spill] sm:$0xff] %v4095_v50  ;;  %v1801_v50 = vmul.f32 %v3919_v6, %v3949_v3 }
 0x2d8   : > { %1546 = vperm.xlu0 %2831, %v3581_v63  }
 0x2dc   : > { %1550 = vperm.xlu0 %2831, %v2936_v51  }
 0x2e0   : > { %1558 = vperm.xlu0 %2831, %v2938_v19   ;;  %v5073_v19 = vmov 0  }
 0x2e1   : > { %1510 = vperm.xlu1 %2832, %v2937_v13   ;;  %v2941_v13 = vld [vmem:[%s3361_s22 + $0x90] sm:$0xff] }
 0x2e4   : > { %1498 = vperm.xlu0 %2831, %v5064_v57  }
 0x2e5   : > { %1514 = vperm.xlu1 %2832, %v3544_v5   ;;  %v1802_v5 = vmul.f32 %v3923_v39, %v3949_v3 }
 0x2e6   : > { %v2096_v63 = vpop.xlane.xlu0 %2095 }
 0x2e7   : > { %2858 = vrcp.f32 %v2096_v63  ;;  %v1996_v63 = vsub.f32 %v1801_v50, %v3955_v31 }
 0x2e8   : > { %v2072_v51 = vpop.xlane.xlu1 %2071  ;;  %1566 = vperm.xlu0 %2831, %v2940_v40   ;;  %v1997_v40 = vsub.f32 %v1802_v5, %v3955_v31 }
 0x2e9   : > { %2860 = vrcp.f32 %v2072_v51  ;;  %1450 = vperm.xlu1 %2832, %v2939_v10   ;;  %v1789_v51 = vmul.f32 %v3919_v6, %v1708_v12  ;;  %v1791_v12 = vmul.f32 %v3919_v6, %v4080_v36 }
 0x2eb   : > { %v1984_v3 = vsub.f32 %v1789_v51, %v4074_v24 }
 0x2ec   : > { %2833 = vset.pattern.permute.xlu0 %v5073_v19 }
 0x2ed   : > { %1518 = vperm.xlu1 %2832, %v2941_v13  }
 0x2ee   : > { %v2099_v57 = vpop.xlane.xlu0 %2098 }
 0x2ef   : > { %2862 = vrcp.f32 %v2099_v57  ;;  %v2050_v57 = vmul.f32 1.442695, %v1996_v63 }
 0x2f0   : > { %v2075_v10 = vpop.xlane.xlu1 %2074 }
 0x2f1   : > { %2864 = vrcp.f32 %v2075_v10  ;;  %1522 = vperm.xlu1 %2832, %v5056_v42   ;;  %v2859_v13 = vpop.eup %2858  ;;  %v2052_v10 = vmul.f32 1.442695, %v1997_v40  ;;  %v1985_v42 = vsub.f32 %v1790_v60, %v4074_v24  ;;  %v1792_v60 = vmul.f32 %v3923_v39, %v4080_v36  ;;  %v2943_v24 = vld [vmem:[%s3361_s22 + $0xa0] sm:$0xff] }
 0x2f2   : > { %v2151_v20 = vmul.f32 %v2859_v13, %v3937_v61  ;;  %v2150_v50 = vmul.f32 %v2859_v13, %v3935_v38  ;;  %v2026_v38 = vmul.f32 1.442695, %v1984_v3  ;;  %2866 = vpow2.f32 %v2050_v57 }
 0x2f3   : > { %v2861_v19 = vpop.eup %2860  ;;  %v1986_v61 = vsub.f32 %v1791_v12, %v4085_v27  ;;  %2868 = vpow2.f32 %v2052_v10  ;;  %v1793_v40 = vmul.f32 %v3919_v6, %v4091_v35  ;;  %v1794_v36 = vmul.f32 %v3923_v39, %v4091_v35  ;;  %v4188_v12 = vld [vmem:[%s4868_s7 + $0x1] ss:$0 sm:$0xff] }
 0x2f4   : > { %v4120_v32 = vpop.permute.xlu1 %1313  ;;  %v2135_v31 = vmul.f32 %v2861_v19, %v3943_v18  ;;  %v2134_v5 = vmul.f32 %v2861_v19, %v3941_v0  ;;  %2183 = vst [vmem:[%s4126_s29 + $0x88] sm:$0xff] %v2151_v20  ;;  %2302 = vmatprep.mubr.f32.mxu1 %v2151_v20  ;;  %2182 = vst [vmem:[%s4126_s29 + $0x80] sm:$0xff] %v2150_v50  ;;  %v2028_v18 = vmul.f32 1.442695, %v1985_v42  ;;  %2870 = vpow2.f32 %v2026_v38 }
 0x2f5   : > { %1458 = vperm.xlu1 %2832, %v2942_v37   ;;  %v1987_v20 = vsub.f32 %v1792_v60, %v4085_v27  ;;  %v2030_v3 = vmul.f32 1.442695, %v1986_v61  ;;  %v1988_v50 = vsub.f32 %v1793_v40, %v4097_v15  ;;  %v1989_v10 = vsub.f32 %v1794_v36, %v4097_v15  ;;  %v2945_v60 = vld [vmem:[%s3361_s22 + $0x28] sm:$0xff] }
 0x2f6   : > { %2167 = vst [vmem:[%s4126_s29 + $0x8] sm:$0xff] %v2135_v31  ;;  %2262 = vmatprep.mubr.f32.mxu0 %v2135_v31  ;;  %2166 = vst [vmem:[%s4126_s29] sm:$0xff] %v2134_v5  ;;  %v4136_v37 = vpop.permute.xlu0 %1317  ;;  %2872 = vpow2.f32 %v2028_v18  ;;  %v1206_v18 = vmul.f32 %v4188_v12, %v3732_v1  ;;  %v2946_v1 = vld [vmem:[%s3361_s22 + $0xb0] sm:$0xff] }
 0x2f7   : > { %v2032_v5 = vmul.f32 1.442695, %v1987_v20  ;;  %2874 = vpow2.f32 %v2030_v3  ;;  %v2034_v15 = vmul.f32 1.442695, %v1988_v50  ;;  %v2036_v38 = vmul.f32 1.442695, %v1989_v10 }
 0x2f8   : > { %v4139_v0 = vpop.permute.xlu1 %1321  ;;  %v4200_v20 = vld [vmem:[%s4868_s7 + $0x2] ss:$0 sm:$0xff]  ;;  %v1208_v50 = vmul.f32 %v4188_v12, %v3736_v23 }
 0x2f9   : > { %1526 = vperm.xlu1 %2832, %v2943_v24   ;;  %v2863_v63 = vpop.eup %2862  ;;  %2876 = vpow2.f32 %v2032_v5 }
 0x2fa   : > { %v4147_v13 = vpop.permute.xlu0 %1325  ;;  %v4150_v27 = vmul.f32 %v2863_v63, %v3953_v25  ;;  %v4153_v19 = vmul.f32 %v2863_v63, %v3951_v49  ;;  %v2944_v25 = vld [vmem:[%s3361_s22 + $0xa8] sm:$0xff]  ;;  %v4177_v49 = vld [vmem:[%s4868_s7] ss:$0 sm:$0xff]  ;;  %2878 = vpow2.f32 %v2034_v15 }
 0x2fb   : > { %v2865_v51 = vpop.eup %2864  ;;  %v1043_v40 = vmul.f32 %v4177_v49, %v3901_v55  ;;  %2880 = vpow2.f32 %v2036_v38  ;;  %v1045_v38 = vmul.f32 %v4177_v49, %v3905_v8 }
 0x2fc   : > { %5074 = vst [vmem:[#allocation13_spill] sm:$0xff] %v4150_v27  ;;  %5075 = vst [vmem:[#allocation14_spill] sm:$0xff] %v4153_v19  ;;  %v4156_v57 = vpop.permute.xlu1 %1329  ;;  %v4159_v31 = vmul.f32 %v2865_v51, %v3959_v53  ;;  %v4162_v35 = vmul.f32 %v2865_v51, %v3957_v4  ;;  %v1041_v53 = vmul.f32 %v4177_v49, %v3897_v52  ;;  %v4191_v61 = vpop.eup %2866 }
 0x2fd   : > { %1530 = vperm.xlu1 %2832, %v2944_v25   ;;  %2185 = vst [vmem:[%s4126_s29 + $0x98] sm:$0xff] %v4150_v27  ;;  %2184 = vst [vmem:[%s4126_s29 + $0x90] sm:$0xff] %v4153_v19  ;;  %v4195_v52 = vpop.eup %2868 }
 0x2fe   : > { %5076 = vst [vmem:[#allocation17_spill] sm:$0xff] %v4159_v31  ;;  %5077 = vst [vmem:[#allocation36_spill] sm:$0xff] %v4162_v35  ;;  %v4179_v4 = vpop.permute.xlu0 %1333  ;;  %v1238_v63 = vadd.f32 %v1206_v18, %v1041_v53  ;;  %v4207_v3 = vpop.eup %2870  ;;  %v2103_v10 = vadd.f32 %v4195_v52, %v4191_v61  ;;  %v1240_v53 = vadd.f32 %v1208_v50, %v1043_v40  ;;  %v2947_v18 = vld [vmem:[%s3361_s22 + $0xb8] sm:$0xff] }
 0x2ff   : > { %2169 = vst [vmem:[%s4126_s29 + $0x18] sm:$0xff] %v4159_v31  ;;  %2168 = vst [vmem:[%s4126_s29 + $0x10] sm:$0xff] %v4162_v35  ;;  %v5078_v40 = vld [vmem:[#allocation79_spill] sm:$0xff] }
 0x300   : > { %v4183_v42 = vpop.permute.xlu1 %1337  ;;  %v4216_v55 = vpop.eup %2872 }
 0x301   : > { %1466 = vperm.xlu1 %2832, %v2945_v60   ;;  %v4224_v23 = vpop.eup %2874 }
 0x302   : > { %v1342_v24 = vpop.permute.xlu0 %1341 }
 0x303   : > { %v1403_v51 = vmul.f32 %v4200_v20, %v1342_v24 }
 0x304   : > { %v4205_v36 = vpop.permute.xlu1 %1345 }
 0x305   : > { %1534 = vperm.xlu1 %2832, %v2946_v1   ;;  %v4212_v5 = vadd.f32 %v1403_v51, %v1238_v63  ;;  %v2085_v63 = vadd.f32 %v4216_v55, %v4207_v3  ;;  %v4230_v51 = vpop.eup %2876  ;;  %v1210_v1 = vmul.f32 %v4188_v12, %v5078_v40 }
 0x306   : > { %v1350_v25 = vpop.permute.xlu0 %1349 }
 0x307   : > { %v1405_v15 = vmul.f32 %v4200_v20, %v1350_v25  ;;  %2104 = vadd.xlane.f32.xlu0 %v2103_v10  ;;  %v1242_v8 = vadd.f32 %v1210_v1, %v1045_v38  ;;  %v2949_v1 = vld [vmem:[%s3361_s22 + $0xc0] sm:$0xff] }
 0x308   : > { %v4219_v60 = vpop.permute.xlu1 %1285 }
 0x309   : > { %1538 = vperm.xlu1 %2832, %v2947_v18   ;;  %v4226_v24 = vadd.f32 %v1405_v15, %v1240_v53  ;;  %v2948_v18 = vld [vmem:[%s3361_s22 + $0x38] sm:$0xff]  ;;  %v4238_v53 = vpop.eup %2878  ;;  %v2088_v15 = vadd.f32 %v4230_v51, %v4224_v23 }
 0x30a   : > { %v4234_v50 = vpop.permute.xlu0 %1353  ;;  %5079 = vst [vmem:[#allocation18_spill] sm:$0xff] %v4238_v53  ;;  %v4242_v19 = vpop.eup %2880 }
 0x30b   : > { %2086 = vadd.xlane.f32.xlu0 %v2085_v63  ;;  %5080 = vst [vmem:[#allocation20_spill] sm:$0xff] %v4242_v19  ;;  %v1049_v63 = vmul.f32 %v4177_v49, %v3913_v7  ;;  %v1047_v7 = vmul.f32 %v4177_v49, %v3909_v17  ;;  %v2953_v17 = vld [vmem:[%s3361_s22 + $0x58] sm:$0xff] }
 0x30c   : > { %v1358_v10 = vpop.permute.xlu1 %1357 }
 0x30d   : > { %v1407_v25 = vmul.f32 %v4200_v20, %v1358_v10  ;;  %1474 = vperm.xlu1 %2832, %v2948_v18   ;;  %v1214_v10 = vmul.f32 %v4188_v12, %v3816_v46  ;;  %v2091_v18 = vadd.f32 %v4242_v19, %v4238_v53  ;;  %v1212_v46 = vmul.f32 %v4188_v12, %v3744_v26  ;;  %v2952_v19 = vld [vmem:[%s3361_s22 + $0xd8] sm:$0xff] }
 0x30e   : > { %v4246_v40 = vpop.permute.xlu0 %1293  ;;  %v2955_v26 = vld [vmem:[%s3361_s22 + $0xf8] sm:$0xff] }
 0x30f   : > { %v4244_v35 = vadd.f32 %v1407_v25, %v1242_v8  ;;  %2089 = vadd.xlane.f32.xlu0 %v2088_v15  ;;  %v1246_v8 = vadd.f32 %v1214_v10, %v1049_v63  ;;  %v2950_v15 = vld [vmem:[%s3361_s22 + $0x40] sm:$0xff]  ;;  %v1244_v63 = vadd.f32 %v1212_v46, %v1047_v7  ;;  %v2951_v10 = vld [vmem:[%s3361_s22 + $0x48] sm:$0xff] }
 0x310   : > { %v4250_v38 = vpop.permute.xlu1 %1289 }
 0x311   : > { %1542 = vperm.xlu1 %2832, %v2949_v1  }
 0x312   : > { %v1374_v27 = vpop.permute.xlu0 %1373 }
 0x313   : > { %v1411_v25 = vmul.f32 %v4200_v20, %v1374_v27  ;;  %2092 = vadd.xlane.f32.xlu0 %v2091_v18 }
 0x314   : > { %v4258_v31 = vpop.permute.xlu1 %1361 }
 0x315   : > { %1478 = vperm.xlu1 %2832, %v2950_v15   ;;  %v4263_v1 = vadd.f32 %v1411_v25, %v1246_v8  ;;  %v2954_v8 = vld [vmem:[%s3361_s22 + $0xe8] sm:$0xff]  ;;  %v2956_v25 = vld [vmem:[%s3361_s22 + $0x78] sm:$0xff]  ;;  %s2605_s22 = sshll.u32 %s3057_s26, 6  ;;  %s2979_s26 = sshll.u32 %s3078_s4, 4  ;;  %s2980_s26 = int_to_ptr.vmem [resolvable:$false] %s2979_s26 }
 0x316   : > { %s2429_s21 = sadd.s32 %s2611_s18, %s2605_s22  ;;  %p2982_p4 = scmp.lt.s32.totalorder %s4728_s20, %s2980_s26 }
 0x317   : > { %s2606_s17 = sshll.u32 %s2429_s21, 7 }
 0x318   : > { %v1366_v53 = vpop.permute.xlu1 %1365  ;;  %s4733_s0 = scalar_lea.hbm %s4871_s11, %s2606_s17 }
 0x319   : > { %v1409_v27 = vmul.f32 %v4200_v20, %v1366_v53  ;;  %1482 = vperm.xlu1 %2832, %v2951_v10  }
 0x31b   : > { %v4269_v18 = vadd.f32 %v1409_v27, %v1244_v63  ;;  %v1788_v63 = vmul.f32 %v3923_v39, %v4065_v58 }
 0x31c   : > { %v4279_v7 = vpop.permute.xlu1 %1297 }
 0x31d   : > { %1554 = vperm.xlu1 %2832, %v2952_v19   ;;  %v1785_v19 = vmul.f32 %v3919_v6, %v4052_v41 }
 0x31f   : > { %v1980_v15 = vsub.f32 %v1785_v19, %v4057_v9  ;;  %v5083_v19 = vsub.f32 %v3978_v2, %v3983_v28 }
 0x320   : > { %v4289_v46 = vpop.permute.xlu1 %1301 }
 0x321   : > { %1486 = vperm.xlu1 %2832, %v4027_v59   ;;  %v1786_v59 = vmul.f32 %v3923_v39, %v4052_v41  ;;  %v2018_v27 = vmul.f32 1.442695, %v1980_v15  ;;  %v1983_v41 = vsub.f32 %v1788_v63, %v4067_v47  ;;  %v5081_v39 = vsub.f32 %v3966_v45, %v3971_v21 }
 0x322   : > { %v5084_v15 = vsub.f32 %v3981_v22, %v3983_v28  ;;  %v5087_v63 = vsub.f32 %v3994_v16, %v3996_v11 }
 0x325   : > { %1490 = vperm.xlu1 %2832, %v2953_v17  }
 0x329   : > { %1562 = vperm.xlu1 %2832, %v2954_v8  }
 0x32d   : > { %1494 = vperm.xlu1 %2832, %v4038_v34   ;;  %v1981_v34 = vsub.f32 %v1786_v59, %v4057_v9  ;;  %v2058_v59 = vmul.f32 1.442695, %v5083_v19  ;;  %v1396_v19 = vmul.f32 %v4200_v20, %v4120_v32 }
 0x32f   : > { %v2020_v17 = vmul.f32 1.442695, %v1981_v34  ;;  %v2060_v34 = vmul.f32 1.442695, %v5084_v15 }
 0x331   : > { %1570 = vperm.xlu1 %2832, %v2955_v26  }
 0x335   : > { %1502 = vperm.xlu1 %2832, %v4044_v62   ;;  %v1787_v62 = vmul.f32 %v3919_v6, %v4065_v58  ;;  %v2054_v58 = vmul.f32 1.442695, %v5081_v39  ;;  %v5094_v39 = vld [vmem:[#allocation50_spill] sm:$0xff] }
 0x337   : > { %v1982_v10 = vsub.f32 %v1787_v62, %v4067_v47 }
 0x339   : > { %1506 = vperm.xlu1 %2832, %v2956_v25   ;;  %v2022_v6 = vmul.f32 1.442695, %v1982_v10  ;;  %v4301_v25 = vpop.permute.xlu1 %1369 }
 0x33d   : > { %v4313_v47 = vpop.permute.xlu1 %1305 }
 0x33f   : > { %v2078_v53 = vpop.xlane.xlu0 %2077 }
 0x340   : > { %2882 = vrcp.f32 %v2078_v53  ;;  %v2024_v53 = vmul.f32 1.442695, %v1983_v41  ;;  %v5091_v41 = vsub.f32 %v4007_v44, %v4012_v48  ;;  %v1035_v44 = vmul.f32 %v4177_v49, %v3889_v33 }
 0x341   : > { %2884 = vpow2.f32 %v2018_v27  ;;  %v2064_v27 = vmul.f32 1.442695, %v5087_v63  ;;  %v4331_v2 = vpop.permute.xlu1 %1309  ;;  %v1397_v33 = vmul.f32 %v4200_v20, %v4136_v37  ;;  %v5102_v37 = vld [vmem:[#allocation19_spill] sm:$0xff] }
 0x342   : > { %2886 = vpow2.f32 %v2020_v17  ;;  %v5090_v17 = vld [vmem:[#allocation77_spill] sm:$0xff] }
 0x343   : > { %2888 = vpow2.f32 %v2022_v6 }
 0x344   : > { %2890 = vpow2.f32 %v2024_v53 }
 0x345   : > { %2892 = vpow2.f32 %v2054_v58  ;;  %v1034_v58 = vmul.f32 %v4177_v49, %v5094_v39 }
 0x347   : > { %v1447_v15 = vpop.permute.xlu0 %1446 }
 0x34a   : > { %v2883_v8 = vpop.eup %2882 }
 0x34b   : > { %v4296_v26 = vmul.f32 %v2883_v8, %v4050_v56  ;;  %v4299_v9 = vmul.f32 %v2883_v8, %v4048_v29  ;;  %v5082_v56 = vsub.f32 %v3969_v54, %v3971_v21  ;;  %v4321_v45 = vpop.eup %2884  ;;  %v5086_v54 = vsub.f32 %v3991_v30, %v3996_v11 }
 0x34c   : > { %5085 = vst [vmem:[#allocation29_spill] sm:$0xff] %v4321_v45  ;;  %v4323_v62 = vpop.eup %2886  ;;  %v1199_v30 = vmul.f32 %v4188_v12, %v5090_v17  ;;  %v2066_v11 = vmul.f32 1.442695, %v5091_v41  ;;  %v5092_v8 = vsub.f32 %v4010_v43, %v4012_v48  ;;  %v1018_v43 = vmul.f32 %v4177_v49, %v3828_v14  ;;  %v4364_v48 = vld [vmem:[%s4868_s7 + $0x3] ss:$0 sm:$0xff] }
 0x34d   : > { %2171 = vst [vmem:[%s4126_s29 + $0x28] sm:$0xff] %v4296_v26  ;;  %2170 = vst [vmem:[%s4126_s29 + $0x20] sm:$0xff] %v4299_v9  ;;  %v2056_v29 = vmul.f32 1.442695, %v5082_v56  ;;  %v2062_v21 = vmul.f32 1.442695, %v5086_v54  ;;  %v4333_v10 = vpop.eup %2888  ;;  %v2079_v22 = vadd.f32 %v4323_v62, %v4321_v45 }
 0x34e   : > { %5088 = vst [vmem:[#allocation21_spill] sm:$0xff] %v4333_v10  ;;  %v4337_v28 = vpop.eup %2890  ;;  %v2068_v6 = vmul.f32 1.442695, %v5092_v8  ;;  %v5096_v54 = vld [vmem:[#allocation71_spill] sm:$0xff]  ;;  %v5098_v14 = vld [vmem:[#allocation64_spill] sm:$0xff] }
 0x34f   : > { %2894 = vpow2.f32 %v2056_v29  ;;  %5089 = vst [vmem:[#allocation30_spill] sm:$0xff] %v4337_v28  ;;  %v4347_v53 = vpop.eup %2892  ;;  %v2082_v56 = vadd.f32 %v4337_v28, %v4333_v10 }
 0x350   : > { %2896 = vpow2.f32 %v2058_v59  ;;  %5093 = vst [vmem:[#allocation22_spill] sm:$0xff] %v4347_v53  ;;  %v1231_v59 = vadd.f32 %v1199_v30, %v1034_v58  ;;  %v5100_v30 = vld [vmem:[#allocation58_spill] sm:$0xff] }
 0x351   : > { %2898 = vpow2.f32 %v2060_v34  ;;  %v1183_v41 = vmul.f32 %v4188_v12, %v5100_v30  ;;  %v1577_v30 = vmul.f32 %v4364_v48, %v1447_v15  ;;  %v4400_v15 = vld [vmem:[%s4869_s8] ss:$0 sm:$0xff] }
 0x352   : > { %2900 = vpow2.f32 %v2062_v21  ;;  %v1200_v21 = vmul.f32 %v4188_v12, %v5096_v54  ;;  %v1428_v39 = vadd.f32 %v1396_v19, %v1231_v59 }
 0x353   : > { %2902 = vpow2.f32 %v2064_v27  ;;  %v1184_v27 = vmul.f32 %v4188_v12, %v5098_v14  ;;  %v1215_v58 = vadd.f32 %v1183_v41, %v1018_v43 }
 0x354   : > { %v1232_v8 = vadd.f32 %v1200_v21, %v1035_v44  ;;  %v1455_v21 = vpop.permute.xlu0 %1454 }
 0x359   : > { %v4353_v29 = vpop.eup %2894 }
 0x35a   : > { %5095 = vst [vmem:[#allocation32_spill] sm:$0xff] %v4353_v29  ;;  %v4371_v63 = vpop.eup %2896 }
 0x35b   : > { %5097 = vst [vmem:[#allocation23_spill] sm:$0xff] %v4371_v63 }
 0x35d   : > { %2080 = vadd.xlane.f32.xlu1 %v2079_v22  ;;  %v2102_v16 = vpop.xlane.xlu1 %2101  ;;  %v5099_v22 = vld [vmem:[#allocation42_spill] sm:$0xff] }
 0x35e   : > { %2904 = vrcp.f32 %v2102_v16  ;;  %v1019_v17 = vmul.f32 %v4177_v49, %v5099_v22  ;;  %v4381_v16 = vpop.eup %2898  ;;  %v1429_v22 = vadd.f32 %v1397_v33, %v1232_v8  ;;  %v5108_v8 = vld [vmem:[#allocation41_spill] sm:$0xff] }
 0x35f   : > { %2906 = vpow2.f32 %v2066_v11  ;;  %v2106_v11 = vadd.f32 %v4353_v29, %v4347_v53  ;;  %5101 = vst [vmem:[#allocation35_spill] sm:$0xff] %v4381_v16  ;;  %v4387_v14 = vpop.eup %2900  ;;  %v2109_v19 = vadd.f32 %v4381_v16, %v4371_v63  ;;  %v5116_v16 = vld [vmem:[#allocation60_spill] sm:$0xff] }
 0x360   : > { %2908 = vpow2.f32 %v2068_v6  ;;  %v1380_v6 = vmul.f32 %v4200_v20, %v5102_v37  ;;  %5104 = vst [vmem:[#allocation25_spill] sm:$0xff] %v4387_v14  ;;  %v4391_v29 = vpop.eup %2902  ;;  %v1216_v44 = vadd.f32 %v1184_v27, %v1019_v17  ;;  %v5107_v27 = vld [vmem:[#allocation12_spill] sm:$0xff] }
 0x361   : > { %2083 = vadd.xlane.f32.xlu1 %v2082_v56  ;;  %v1511_v34 = vpop.permute.xlu1 %1510  ;;  %v5103_v56 = vld [vmem:[#allocation11_spill] sm:$0xff]  ;;  %5105 = vst [vmem:[#allocation79_spill] sm:$0xff] %v4391_v29 }
 0x362   : > { %v1593_v32 = vmul.f32 %v4364_v48, %v1511_v34  ;;  %v1381_v34 = vmul.f32 %v4200_v20, %v5103_v56  ;;  %v1412_v43 = vadd.f32 %v1380_v6, %v1215_v58 }
 0x364   : > { %v1625_v10 = vadd.f32 %v1593_v32, %v1428_v39  ;;  %v1413_v33 = vadd.f32 %v1381_v34, %v1216_v44  ;;  %v5110_v44 = vld [vmem:[#allocation40_spill] sm:$0xff] }
 0x365   : > { %2107 = vadd.xlane.f32.xlu1 %v2106_v11  ;;  %v1515_v54 = vpop.permute.xlu1 %1514  ;;  %v5106_v11 = vld [vmem:[#allocation78_spill] sm:$0xff] }
 0x366   : > { %v1594_v53 = vmul.f32 %v4364_v48, %v1515_v54  ;;  %v1201_v37 = vmul.f32 %v4188_v12, %v5106_v11  ;;  %v1664_v58 = vadd.f32 %v4400_v15, %v1625_v10  ;;  %v5109_v54 = vld [vmem:[#allocation51_spill] sm:$0xff]  ;;  %v2112_v11 = vadd.f32 %v4391_v29, %v4387_v14  ;;  %v4433_v14 = vpop.permute.xlu0 %1462 }
 0x367   : > { %v1398_v10 = vmul.f32 %v4200_v20, %v4139_v0 }
 0x368   : > { %v2905_v59 = vpop.eup %2904  ;;  %v1626_v41 = vadd.f32 %v1594_v53, %v1429_v22  ;;  %v1609_v53 = vadd.f32 %v1577_v30, %v1412_v43  ;;  %v1036_v22 = vmul.f32 %v4177_v49, %v5109_v54 }
 0x369   : > { %2110 = vadd.xlane.f32.xlu1 %v2109_v19  ;;  %v1451_v32 = vpop.permute.xlu1 %1450  ;;  %v4403_v17 = vmul.f32 %v2905_v59, %v5107_v27  ;;  %v4406_v39 = vmul.f32 %v2905_v59, %v5108_v8  ;;  %v4411_v34 = vpop.eup %2906  ;;  %v1037_v19 = vmul.f32 %v4177_v49, %v5110_v44  ;;  %v5112_v8 = vld [vmem:[#allocation73_spill] sm:$0xff]  ;;  %v1399_v44 = vmul.f32 %v4200_v20, %v4147_v13 }
 0x36a   : > { %v1578_v6 = vmul.f32 %v4364_v48, %v1451_v32  ;;  %v1665_v56 = vadd.f32 %v4400_v15, %v1626_v41  ;;  %v4423_v30 = vpop.eup %2908  ;;  %v5111_v41 = vld [vmem:[#allocation59_spill] sm:$0xff]  ;;  %v1233_v27 = vadd.f32 %v1201_v37, %v1036_v22  ;;  %v1202_v54 = vmul.f32 %v4188_v12, %v5112_v8 }
 0x36b   : > { %2187 = vst [vmem:[%s4126_s29 + $0xa8] sm:$0xff] %v4403_v17  ;;  %2186 = vst [vmem:[%s4126_s29 + $0xa0] sm:$0xff] %v4406_v39  ;;  %v1185_v32 = vmul.f32 %v4188_v12, %v5111_v41  ;;  %v1648_v0 = vadd.f32 %v4400_v15, %v1609_v53  ;;  %v2115_v13 = vadd.f32 %v4423_v30, %v4411_v34 }
 0x36c   : > { %v1610_v59 = vadd.f32 %v1578_v6, %v1413_v33  ;;  %v2692_v43 = vpack.c.bf16 %v1665_v56, %v1664_v58  ;;  %v5113_v6 = vld [vmem:[#allocation43_spill] sm:$0xff]  ;;  %v5114_v58 = vld [vmem:[#allocation26_spill] sm:$0xff]  ;;  %v1234_v22 = vadd.f32 %v1202_v54, %v1037_v19  ;;  %v1186_v53 = vmul.f32 %v4188_v12, %v5116_v16 }
 0x36d   : > { %2113 = vadd.xlane.f32.xlu1 %v2112_v11  ;;  %v1519_v29 = vpop.permute.xlu1 %1518  ;;  %v1020_v37 = vmul.f32 %v4177_v49, %v5113_v6  ;;  %v1021_v56 = vmul.f32 %v4177_v49, %v5114_v58  ;;  %v5115_v11 = vld [vmem:[#allocation27_spill] sm:$0xff]  ;;  %v1579_v19 = vmul.f32 %v4364_v48, %v1455_v21 }
 0x36e   : > { %v1595_v63 = vmul.f32 %v4364_v48, %v1519_v29  ;;  %2693 = vmatprep.subr.bf16.mxu0 %v2692_v43  ;;  %2724 = vmatprep.subr.bf16.mxu1 %v2692_v43  ;;  %v1649_v33 = vadd.f32 %v4400_v15, %v1610_v59  ;;  %v1382_v41 = vmul.f32 %v4200_v20, %v5115_v11  ;;  %v5117_v59 = vld [vmem:[#allocation24_spill] sm:$0xff] }
 0x36f   : > { %v1430_v29 = vadd.f32 %v1398_v10, %v1233_v27  ;;  %v1217_v43 = vadd.f32 %v1185_v32, %v1020_v37  ;;  %v1383_v28 = vmul.f32 %v4200_v20, %v5117_v59  ;;  %v1431_v6 = vadd.f32 %v1399_v44, %v1234_v22  ;;  %v4452_v10 = vpop.permute.xlu0 %1470  ;;  %v5122_v59 = vld [vmem:[#allocation44_spill] sm:$0xff] }
 0x370   : > { %v2694_v8 = vpack.c.bf16 %v1649_v33, %v1648_v0  ;;  %v1218_v11 = vadd.f32 %v1186_v53, %v1021_v56  ;;  %v5118_v0 = vld [vmem:[#allocation80_spill] sm:$0xff]  ;;  %v5120_v56 = vld [vmem:[#allocation9_spill] sm:$0xff] }
 0x371   : > { %2116 = vadd.xlane.f32.xlu1 %v2115_v13  ;;  %v1523_v45 = vpop.permute.xlu1 %1522  ;;  %v1627_v54 = vadd.f32 %v1595_v63, %v1430_v29  ;;  %v1414_v32 = vadd.f32 %v1382_v41, %v1217_v43  ;;  %v1203_v16 = vmul.f32 %v4188_v12, %v5118_v0  ;;  %v1039_v29 = vmul.f32 %v4177_v49, %v5120_v56  ;;  %v5121_v41 = vld [vmem:[#allocation65_spill] sm:$0xff] }
 0x372   : > { %v1596_v58 = vmul.f32 %v4364_v48, %v1523_v45  ;;  %2695 = vmatpush3.bf16.msra.mxu0 %v2694_v8  ;;  %2732 = vmatpush3.bf16.msra.mxu1 %v2694_v8  ;;  %v1415_v33 = vadd.f32 %v1383_v28, %v1218_v11  ;;  %v5119_v45 = vld [vmem:[#allocation52_spill] sm:$0xff]  ;;  %v1187_v8 = vmul.f32 %v4188_v12, %v5121_v41  ;;  %v5126_v56 = vld [vmem:[#allocation61_spill] sm:$0xff] }
 0x373   : > { %v1611_v44 = vadd.f32 %v1579_v19, %v1414_v32  ;;  %v1666_v22 = vadd.f32 %v4400_v15, %v1627_v54  ;;  %v1038_v13 = vmul.f32 %v4177_v49, %v5119_v45  ;;  %v1400_v28 = vmul.f32 %v4200_v20, %v4156_v57  ;;  %v5123_v54 = vld [vmem:[#allocation75_spill] sm:$0xff]  ;;  %v4473_v32 = vpop.permute.xlu0 %1546 }
 0x374   : > { %v1628_v27 = vadd.f32 %v1596_v58, %v1431_v6  ;;  %v1022_v6 = vmul.f32 %v4177_v49, %v5122_v59  ;;  %v1204_v58 = vmul.f32 %v4188_v12, %v5123_v54  ;;  %v1401_v11 = vmul.f32 %v4200_v20, %v4179_v4 }
 0x375   : > { %v1459_v37 = vpop.permute.xlu1 %1458  ;;  %v1235_v19 = vadd.f32 %v1203_v16, %v1038_v13  ;;  %v1650_v0 = vadd.f32 %v4400_v15, %v1611_v44  ;;  %v1188_v41 = vmul.f32 %v4188_v12, %v5126_v56  ;;  %v5127_v44 = vld [vmem:[#allocation15_spill] sm:$0xff] }
 0x376   : > { %v1667_v21 = vadd.f32 %v4400_v15, %v1628_v27  ;;  %v1580_v63 = vmul.f32 %v4364_v48, %v1459_v37  ;;  %v1219_v13 = vadd.f32 %v1187_v8, %v1022_v6 }
 0x377   : > { %v1432_v45 = vadd.f32 %v1400_v28, %v1235_v19  ;;  %v4489_v28 = vpop.permute.xlu0 %1550  ;;  %v5128_v19 = vld [vmem:[#allocation81_spill] sm:$0xff] }
 0x378   : > { %v1612_v43 = vadd.f32 %v1580_v63, %v1415_v33  ;;  %v2696_v53 = vpack.c.bf16 %v1667_v21, %v1666_v22  ;;  %v5124_v33 = vld [vmem:[#allocation31_spill] sm:$0xff]  ;;  %v1236_v22 = vadd.f32 %v1204_v58, %v1039_v29  ;;  %v5125_v21 = vld [vmem:[#allocation28_spill] sm:$0xff] }
 0x379   : > { %v1527_v27 = vpop.permute.xlu1 %1526  ;;  %v1023_v16 = vmul.f32 %v4177_v49, %v5124_v33  ;;  %v1384_v63 = vmul.f32 %v4200_v20, %v5125_v21  ;;  %v5129_v21 = vld [vmem:[#allocation53_spill] sm:$0xff] }
 0x37a   : > { %v1651_v37 = vadd.f32 %v4400_v15, %v1612_v43  ;;  %v1597_v57 = vmul.f32 %v4364_v48, %v1527_v27  ;;  %2697 = vmatprep.subr.bf16.mxu0 %v2696_v53  ;;  %2725 = vmatprep.subr.bf16.mxu1 %v2696_v53  ;;  %v1385_v43 = vmul.f32 %v4200_v20, %v5127_v44 }
 0x37b   : > { %v1433_v59 = vadd.f32 %v1401_v11, %v1236_v22  ;;  %v1581_v53 = vmul.f32 %v4364_v48, %v4433_v14  ;;  %v1220_v58 = vadd.f32 %v1188_v41, %v1023_v16  ;;  %v1416_v8 = vadd.f32 %v1384_v63, %v1219_v13  ;;  %v5130_v13 = vld [vmem:[#allocation68_spill] sm:$0xff]  ;;  %v4502_v44 = vpop.permute.xlu0 %1558 }
 0x37c   : > { %v2698_v4 = vpack.c.bf16 %v1651_v37, %v1650_v0  ;;  %v1629_v27 = vadd.f32 %v1597_v57, %v1432_v45  ;;  %v1205_v0 = vmul.f32 %v4188_v12, %v5128_v19  ;;  %v1040_v45 = vmul.f32 %v4177_v49, %v5129_v21 }
 0x37d   : > { %v1531_v54 = vpop.permute.xlu1 %1530  ;;  %v1417_v37 = vadd.f32 %v1385_v43, %v1220_v58  ;;  %v1613_v11 = vadd.f32 %v1581_v53, %v1416_v8  ;;  %v1402_v16 = vmul.f32 %v4200_v20, %v4183_v42  ;;  %v1189_v56 = vmul.f32 %v4188_v12, %v5130_v13  ;;  %v5133_v8 = vld [vmem:[#allocation33_spill] sm:$0xff] }
 0x37e   : > { %v1598_v29 = vmul.f32 %v4364_v48, %v1531_v54  ;;  %2699 = vmatpush3.bf16.msra.mxu0 %v2698_v4  ;;  %2733 = vmatpush3.bf16.msra.mxu1 %v2698_v4  ;;  %v1668_v22 = vadd.f32 %v4400_v15, %v1629_v27  ;;  %v1237_v41 = vadd.f32 %v1205_v0, %v1040_v45  ;;  %v5131_v27 = vld [vmem:[#allocation45_spill] sm:$0xff] }
 0x37f   : > { %v1024_v42 = vmul.f32 %v4177_v49, %v5131_v27 }
 0x380   : > { %v1630_v6 = vadd.f32 %v1598_v29, %v1433_v59  ;;  %v1652_v59 = vadd.f32 %v4400_v15, %v1613_v11  ;;  %v5132_v29 = vld [vmem:[#allocation8_spill] sm:$0xff]  ;;  %v1434_v19 = vadd.f32 %v1402_v16, %v1237_v41  ;;  %v4522_v41 = vpop.permute.xlu0 %1498 }
 0x381   : > { %v1467_v33 = vpop.permute.xlu1 %1466  ;;  %v1025_v58 = vmul.f32 %v4177_v49, %v5132_v29  ;;  %v2601_v29 = vld [vmem:[#allocation4] ss:$0 sm:$0xff] }
 0x382   : > { %v1669_v14 = vadd.f32 %v4400_v15, %v1630_v6  ;;  %v1582_v57 = vmul.f32 %v4364_v48, %v1467_v33  ;;  %v1386_v6 = vmul.f32 %v4200_v20, %v5133_v8  ;;  %v5134_v33 = vld [vmem:[#allocation62_spill] sm:$0xff]  ;;  %v1602_v8 = vmul.f32 %v4364_v48, %v4473_v32  ;;  %2350 = vperm.xlu0 %2833, %v2601_v29  }
 0x383   : > { %v1190_v11 = vmul.f32 %v4188_v12, %v5134_v33  ;;  %v5138_v33 = vld [vmem:[#allocation70_spill] sm:$0xff]  ;;  %v1389_v29 = vmul.f32 %v4200_v20, %v4219_v60 }
 0x384   : > { %v1614_v63 = vadd.f32 %v1582_v57, %v1417_v37  ;;  %v2700_v4 = vpack.c.bf16 %v1669_v14, %v1668_v22  ;;  %v1221_v37 = vadd.f32 %v1189_v56, %v1024_v42  ;;  %v5135_v22 = vld [vmem:[#allocation16_spill] sm:$0xff]  ;;  %v1583_v57 = vmul.f32 %v4364_v48, %v4452_v10 }
 0x385   : > { %v1535_v43 = vpop.permute.xlu1 %1534  ;;  %v1387_v14 = vmul.f32 %v4200_v20, %v5135_v22  ;;  %v1222_v13 = vadd.f32 %v1190_v11, %v1025_v58  ;;  %v1404_v10 = vmul.f32 %v4200_v20, %v4205_v36  ;;  %v1191_v11 = vmul.f32 %v4188_v12, %v5138_v33 }
 0x386   : > { %v1653_v54 = vadd.f32 %v4400_v15, %v1614_v63  ;;  %v1599_v53 = vmul.f32 %v4364_v48, %v1535_v43  ;;  %2701 = vmatprep.subr.bf16.mxu0 %v2700_v4  ;;  %2726 = vmatprep.subr.bf16.mxu1 %v2700_v4  ;;  %v5136_v4 = vld [vmem:[#allocation82_spill] sm:$0xff]  ;;  %v1418_v56 = vadd.f32 %v1386_v6, %v1221_v37 }
 0x387   : > { %v1207_v16 = vmul.f32 %v4188_v12, %v5136_v4  ;;  %v1419_v27 = vadd.f32 %v1387_v14, %v1222_v13  ;;  %v4537_v14 = vpop.permute.xlu0 %1566  ;;  %v1634_v32 = vadd.f32 %v1602_v8, %v4226_v24  ;;  %v1406_v33 = vmul.f32 %v4200_v20, %v4234_v50 }
 0x388   : > { %v2702_v0 = vpack.c.bf16 %v1653_v54, %v1652_v59  ;;  %v1631_v45 = vadd.f32 %v1599_v53, %v1434_v19  ;;  %v5137_v59 = vld [vmem:[#allocation54_spill] sm:$0xff]  ;;  %v1615_v53 = vadd.f32 %v1583_v57, %v1418_v56 }
 0x389   : > { %v1539_v21 = vpop.permute.xlu1 %1538  ;;  %v1042_v54 = vmul.f32 %v4177_v49, %v5137_v59  ;;  %v5141_v56 = vld [vmem:[#allocation38_spill] sm:$0xff] }
 0x38a   : > { %v1600_v63 = vmul.f32 %v4364_v48, %v1539_v21  ;;  %2703 = vmatpush3.bf16.msra.mxu0 %v2702_v0  ;;  %2734 = vmatpush3.bf16.msra.mxu1 %v2702_v0  ;;  %v1670_v58 = vadd.f32 %v4400_v15, %v1631_v45  ;;  %v1654_v22 = vadd.f32 %v4400_v15, %v1615_v53  ;;  %v5143_v53 = vld [vmem:[#allocation83_spill] sm:$0xff] }
 0x38c   : > { %v1632_v43 = vadd.f32 %v1600_v63, %v4212_v5  ;;  %v1239_v5 = vadd.f32 %v1207_v16, %v1042_v54  ;;  %v5139_v63 = vld [vmem:[#allocation46_spill] sm:$0xff] }
 0x38d   : > { %v1475_v42 = vpop.permute.xlu1 %1474  ;;  %v1026_v4 = vmul.f32 %v4177_v49, %v5139_v63  ;;  %v5140_v16 = vld [vmem:[#allocation34_spill] sm:$0xff] }
 0x38e   : > { %v1671_v6 = vadd.f32 %v4400_v15, %v1632_v43  ;;  %v1584_v19 = vmul.f32 %v4364_v48, %v1475_v42  ;;  %v1436_v36 = vadd.f32 %v1404_v10, %v1239_v5  ;;  %v1027_v13 = vmul.f32 %v4177_v49, %v5140_v16  ;;  %v5142_v10 = vld [vmem:[#allocation63_spill] sm:$0xff]  ;;  %v5145_v16 = vld [vmem:[#allocation72_spill] sm:$0xff] }
 0x38f   : > { %v1388_v43 = vmul.f32 %v4200_v20, %v5141_v56  ;;  %v1192_v24 = vmul.f32 %v4188_v12, %v5142_v10  ;;  %v1209_v42 = vmul.f32 %v4188_v12, %v5143_v53  ;;  %v1193_v56 = vmul.f32 %v4188_v12, %v5145_v16 }
 0x390   : > { %v1616_v0 = vadd.f32 %v1584_v19, %v1419_v27  ;;  %v2704_v37 = vpack.c.bf16 %v1671_v6, %v1670_v58  ;;  %v1223_v27 = vadd.f32 %v1191_v11, %v1026_v4  ;;  %v1673_v6 = vadd.f32 %v4400_v15, %v1634_v32 }
 0x391   : > { %v1543_v57 = vpop.permute.xlu1 %1542  ;;  %v1224_v11 = vadd.f32 %v1192_v24, %v1027_v13 }
 0x392   : > { %v1655_v21 = vadd.f32 %v4400_v15, %v1616_v0  ;;  %v1601_v45 = vmul.f32 %v4364_v48, %v1543_v57  ;;  %2705 = vmatprep.subr.bf16.mxu0 %v2704_v37  ;;  %2727 = vmatprep.subr.bf16.mxu1 %v2704_v37  ;;  %v5144_v0 = vld [vmem:[#allocation55_spill] sm:$0xff]  ;;  %v1603_v57 = vmul.f32 %v4364_v48, %v4489_v28 }
 0x393   : > { %v1044_v37 = vmul.f32 %v4177_v49, %v5144_v0 }
 0x394   : > { %v1633_v59 = vadd.f32 %v1601_v45, %v1436_v36  ;;  %v2706_v54 = vpack.c.bf16 %v1655_v21, %v1654_v22  ;;  %v2105_v58 = vpop.xlane.xlu0 %2104  ;;  %v1420_v36 = vadd.f32 %v1388_v43, %v1223_v27  ;;  %v1421_v45 = vadd.f32 %v1389_v29, %v1224_v11  ;;  %v5146_v43 = vld [vmem:[#allocation47_spill] sm:$0xff]  ;;  %v5147_v29 = vld [vmem:[#allocation66_spill] sm:$0xff] }
 0x395   : > { %v1479_v8 = vpop.permute.xlu1 %1478  ;;  %2910 = vrcp.f32 %v2105_v58  ;;  %v1241_v22 = vadd.f32 %v1209_v42, %v1044_v37 }
 0x396   : > { %v1672_v19 = vadd.f32 %v4400_v15, %v1633_v59  ;;  %v1585_v5 = vmul.f32 %v4364_v48, %v1479_v8  ;;  %2707 = vmatpush3.bf16.msra.mxu0 %v2706_v54  ;;  %2735 = vmatpush3.bf16.msra.mxu1 %v2706_v54  ;;  %v1028_v59 = vmul.f32 %v4177_v49, %v5146_v43 }
 0x397   : > { %v1438_v50 = vadd.f32 %v1406_v33, %v1241_v22  ;;  %v1194_v8 = vmul.f32 %v4188_v12, %v5147_v29  ;;  %v5149_v33 = vld [vmem:[#allocation84_spill] sm:$0xff] }
 0x398   : > { %v2708_v60 = vpack.c.bf16 %v1673_v6, %v1672_v19  ;;  %v2087_v21 = vpop.xlane.xlu0 %2086  ;;  %v1617_v63 = vadd.f32 %v1585_v5, %v1420_v36  ;;  %v1225_v42 = vadd.f32 %v1193_v56, %v1028_v59  ;;  %v5148_v6 = vld [vmem:[#allocation10_spill] sm:$0xff]  ;;  %v1390_v5 = vmul.f32 %v4200_v20, %v4250_v38 }
 0x399   : > { %v1483_v32 = vpop.permute.xlu1 %1482  ;;  %2912 = vrcp.f32 %v2087_v21  ;;  %v1635_v54 = vadd.f32 %v1603_v57, %v1438_v50  ;;  %v1029_v19 = vmul.f32 %v4177_v49, %v5148_v6  ;;  %v1211_v11 = vmul.f32 %v4188_v12, %v5149_v33  ;;  %v5155_v6 = vld [vmem:[#allocation85_spill] sm:$0xff] }
 0x39a   : > { %v1586_v4 = vmul.f32 %v4364_v48, %v1483_v32  ;;  %2709 = vmatprep.subr.bf16.mxu0 %v2708_v60  ;;  %2728 = vmatprep.subr.bf16.mxu1 %v2708_v60  ;;  %v1656_v10 = vadd.f32 %v4400_v15, %v1617_v63  ;;  %v1391_v36 = vmul.f32 %v4200_v20, %v4246_v40  ;;  %v5151_v63 = vld [vmem:[#allocation74_spill] sm:$0xff] }
 0x39b   : > { %v1674_v38 = vadd.f32 %v4400_v15, %v1635_v54  ;;  %v1226_v50 = vadd.f32 %v1194_v8, %v1029_v19  ;;  %v1422_v59 = vadd.f32 %v1390_v5, %v1225_v42  ;;  %v5154_v42 = vld [vmem:[#allocation48_spill] sm:$0xff]  ;;  %v1213_v19 = vmul.f32 %v4188_v12, %v5155_v6  ;;  %v5156_v5 = vld [vmem:[#allocation57_spill] sm:$0xff] }
 0x39c   : > { %v1618_v13 = vadd.f32 %v1586_v4, %v1421_v45  ;;  %v2090_v28 = vpop.xlane.xlu0 %2089  ;;  %v5150_v45 = vld [vmem:[#allocation56_spill] sm:$0xff]  ;;  %v1195_v4 = vmul.f32 %v4188_v12, %v5151_v63  ;;  %v1392_v33 = vmul.f32 %v4200_v20, %v4279_v7 }
 0x39d   : > { %v1555_v27 = vpop.permute.xlu1 %1554  ;;  %2914 = vrcp.f32 %v2090_v28  ;;  %v1046_v40 = vmul.f32 %v4177_v49, %v5150_v45  ;;  %v1605_v28 = vmul.f32 %v4364_v48, %v4502_v44 }
 0x39e   : > { %v1657_v24 = vadd.f32 %v4400_v15, %v1618_v13  ;;  %v1604_v53 = vmul.f32 %v4364_v48, %v1555_v27  ;;  %v5153_v13 = vld [vmem:[#allocation39_spill] sm:$0xff] }
 0x39f   : > { %v2911_v58 = vpop.eup %2910  ;;  %v1031_v43 = vmul.f32 %v4177_v49, %v5153_v13  ;;  %v1243_v27 = vadd.f32 %v1211_v11, %v1046_v40 }
 0x3a0   : > { %v1636_v0 = vadd.f32 %v1604_v53, %v4244_v35  ;;  %v2710_v37 = vpack.c.bf16 %v1657_v24, %v1656_v10  ;;  %v2093_v22 = vpop.xlane.xlu0 %2092  ;;  %v4583_v57 = vmul.f32 %v2911_v58, %v4195_v52  ;;  %v4586_v32 = vmul.f32 %v2911_v58, %v4191_v61  ;;  %v5152_v52 = vld [vmem:[#allocation67_spill] sm:$0xff] }
 0x3a1   : > { %v1487_v60 = vpop.permute.xlu1 %1486  ;;  %2916 = vrcp.f32 %v2093_v22  ;;  %v1196_v16 = vmul.f32 %v4188_v12, %v5152_v52  ;;  %v1408_v61 = vmul.f32 %v4200_v20, %v4258_v31  ;;  %v1423_v53 = vadd.f32 %v1391_v36, %v1226_v50  ;;  %v5157_v50 = vld [vmem:[#allocation20_spill] sm:$0xff] }
 0x3a2   : > { %v1675_v35 = vadd.f32 %v4400_v15, %v1636_v0  ;;  %v1587_v21 = vmul.f32 %v4364_v48, %v1487_v60  ;;  %2711 = vmatpush3.bf16.msra.mxu0 %v2710_v37  ;;  %2736 = vmatpush3.bf16.msra.mxu1 %v2710_v37  ;;  %2189 = vst [vmem:[%s4126_s29 + $0xb8] sm:$0xff] %v4583_v57  ;;  %2188 = vst [vmem:[%s4126_s29 + $0xb0] sm:$0xff] %v4586_v32 }
 0x3a3   : > { %v2913_v56 = vpop.eup %2912  ;;  %v1030_v58 = vmul.f32 %v4177_v49, %v5154_v42  ;;  %v1440_v44 = vadd.f32 %v1408_v61, %v1243_v27  ;;  %v1048_v0 = vmul.f32 %v4177_v49, %v5156_v5  ;;  %v1228_v37 = vadd.f32 %v1196_v16, %v1031_v43  ;;  %v5158_v43 = vld [vmem:[#allocation18_spill] sm:$0xff] }
 0x3a4   : > { %v2712_v54 = vpack.c.bf16 %v1675_v35, %v1674_v38  ;;  %v4608_v31 = vmul.f32 %v2913_v56, %v4216_v55  ;;  %v4611_v24 = vmul.f32 %v2913_v56, %v4207_v3  ;;  %v1619_v29 = vadd.f32 %v1587_v21, %v1422_v59 }
 0x3a5   : > { %v1491_v10 = vpop.permute.xlu1 %1490  ;;  %v1393_v55 = vmul.f32 %v4200_v20, %v4289_v46  ;;  %v1637_v36 = vadd.f32 %v1605_v28, %v1440_v44  ;;  %v1590_v60 = vmul.f32 %v4364_v48, %v4522_v41  ;;  %v1227_v35 = vadd.f32 %v1195_v4, %v1030_v58 }
 0x3a6   : > { %v1588_v8 = vmul.f32 %v4364_v48, %v1491_v10  ;;  %2713 = vmatprep.subr.bf16.mxu0 %v2712_v54  ;;  %2729 = vmatprep.subr.bf16.mxu1 %v2712_v54  ;;  %2177 = vst [vmem:[%s4126_s29 + $0x58] sm:$0xff] %v4608_v31  ;;  %2176 = vst [vmem:[%s4126_s29 + $0x50] sm:$0xff] %v4611_v24  ;;  %v1658_v21 = vadd.f32 %v4400_v15, %v1619_v29 }
 0x3a7   : > { %v2915_v3 = vpop.eup %2914  ;;  %v1245_v7 = vadd.f32 %v1213_v19, %v1048_v0  ;;  %v1425_v63 = vadd.f32 %v1393_v55, %v1228_v37  ;;  %v1676_v16 = vadd.f32 %v4400_v15, %v1637_v36  ;;  %v1607_v54 = vmul.f32 %v4364_v48, %v4537_v14  ;;  %v5160_v19 = vld [vmem:[#allocation49_spill] sm:$0xff] }
 0x3a8   : > { %v1620_v11 = vadd.f32 %v1588_v8, %v1423_v53  ;;  %v4631_v22 = vmul.f32 %v2915_v3, %v4230_v51  ;;  %v4634_v38 = vmul.f32 %v2915_v3, %v4224_v23  ;;  %v1424_v51 = vadd.f32 %v1392_v33, %v1227_v35  ;;  %v5159_v53 = vld [vmem:[#allocation76_spill] sm:$0xff]  ;;  %v5161_v55 = vld [vmem:[#allocation37_spill] sm:$0xff] }
 0x3a9   : > { %v1563_v46 = vpop.permute.xlu1 %1562  ;;  %v1410_v23 = vmul.f32 %v4200_v20, %v4301_v25  ;;  %v1622_v61 = vadd.f32 %v1590_v60, %v1425_v63  ;;  %v1197_v29 = vmul.f32 %v4188_v12, %v5159_v53  ;;  %v1032_v44 = vmul.f32 %v4177_v49, %v5160_v19 }
 0x3aa   : > { %v1659_v45 = vadd.f32 %v4400_v15, %v1620_v11  ;;  %v1606_v40 = vmul.f32 %v4364_v48, %v1563_v46  ;;  %2179 = vst [vmem:[%s4126_s29 + $0x68] sm:$0xff] %v4631_v22  ;;  %2178 = vst [vmem:[%s4126_s29 + $0x60] sm:$0xff] %v4634_v38  ;;  %v1033_v3 = vmul.f32 %v4177_v49, %v5161_v55  ;;  %v5162_v11 = vld [vmem:[#allocation69_spill] sm:$0xff] }
 0x3ab   : > { %v2917_v41 = vpop.eup %2916  ;;  %v1661_v8 = vadd.f32 %v4400_v15, %v1622_v61  ;;  %v1394_v5 = vmul.f32 %v4200_v20, %v4313_v47  ;;  %v1229_v33 = vadd.f32 %v1197_v29, %v1032_v44  ;;  %v1198_v36 = vmul.f32 %v4188_v12, %v5162_v11  ;;  %v5165_v61 = vld [vmem:[#allocation36_spill] sm:$0xff]  ;;  %v5171_v29 = vld [vmem:[#allocation22_spill] sm:$0xff] }
 0x3ac   : > { %v1638_v4 = vadd.f32 %v1606_v40, %v4269_v18  ;;  %v2714_v52 = vpack.c.bf16 %v1659_v45, %v1658_v21  ;;  %v4648_v13 = vmul.f32 %v2917_v41, %v5157_v50  ;;  %v4651_v59 = vmul.f32 %v2917_v41, %v5158_v43 }
 0x3ad   : > { %v1495_v56 = vpop.permute.xlu1 %1494  ;;  %v1442_v18 = vadd.f32 %v1410_v23, %v1245_v7  ;;  %v1395_v60 = vmul.f32 %v4200_v20, %v4331_v2  ;;  %v1230_v47 = vadd.f32 %v1198_v36, %v1033_v3  ;;  %v2957_v23 = vld [vmem:[%s4126_s29] sm:$0xff] }
 0x3ae   : > { %v1677_v27 = vadd.f32 %v4400_v15, %v1638_v4  ;;  %v1589_v25 = vmul.f32 %v4364_v48, %v1495_v56  ;;  %2715 = vmatpush3.bf16.msra.mxu0 %v2714_v52  ;;  %2737 = vmatpush3.bf16.msra.mxu1 %v2714_v52  ;;  %2181 = vst [vmem:[%s4126_s29 + $0x78] sm:$0xff] %v4648_v13  ;;  %2180 = vst [vmem:[%s4126_s29 + $0x70] sm:$0xff] %v4651_v59  ;;  %v2958_v4 = vld [vmem:[%s4126_s29 + $0x80] sm:$0xff]  ;;  %v5163_v52 = vld [vmem:[#allocation17_spill] sm:$0xff] }
 0x3af   : > { %v1639_v14 = vadd.f32 %v1607_v54, %v1442_v18  ;;  %v1427_v7 = vadd.f32 %v1395_v60, %v1230_v47 }
 0x3b0   : > { %v1621_v28 = vadd.f32 %v1589_v25, %v1424_v51  ;;  %v2716_v10 = vpack.c.bf16 %v1677_v27, %v1676_v16  ;;  %v5164_v16 = vld [vmem:[#allocation13_spill] sm:$0xff] }
 0x3b1   : > { %v1571_v42 = vpop.permute.xlu1 %1570  ;;  %v1678_v35 = vadd.f32 %v4400_v15, %v1639_v14  ;;  %v5169_v25 = vld [vmem:[#allocation21_spill] sm:$0xff]  ;;  %v5172_v14 = vld [vmem:[#allocation35_spill] sm:$0xff] }
 0x3b2   : > { %v1660_v58 = vadd.f32 %v4400_v15, %v1621_v28  ;;  %v1608_v6 = vmul.f32 %v4364_v48, %v1571_v42  ;;  %2717 = vmatprep.subr.bf16.mxu0 %v2716_v10  ;;  %2730 = vmatprep.subr.bf16.mxu1 %v2716_v10  ;;  %v5170_v10 = vld [vmem:[#allocation32_spill] sm:$0xff] }
 0x3b4   : > { %v1640_v0 = vadd.f32 %v1608_v6, %v4263_v1  ;;  %v2718_v37 = vpack.c.bf16 %v1661_v8, %v1660_v58  ;;  %v1426_v1 = vadd.f32 %v1394_v5, %v1229_v33  ;;  %v5173_v58 = vld [vmem:[#allocation23_spill] sm:$0xff] }
 0x3b5   : > { %v1503_v46 = vpop.permute.xlu1 %1502 }
 0x3b6   : > { %v1679_v21 = vadd.f32 %v4400_v15, %v1640_v0  ;;  %v1591_v49 = vmul.f32 %v4364_v48, %v1503_v46  ;;  %2719 = vmatpush3.bf16.msra.mxu0 %v2718_v37  ;;  %2738 = vmatpush3.bf16.msra.mxu1 %v2718_v37 }
 0x3b8   : > { %v2720_v45 = vpack.c.bf16 %v1679_v21, %v1678_v35  ;;  %v1623_v12 = vadd.f32 %v1591_v49, %v1426_v1 }
 0x3b9   : > { %v1507_v40 = vpop.permute.xlu1 %1506 }
 0x3ba   : > { %v1592_v63 = vmul.f32 %v4364_v48, %v1507_v40  ;;  %2721 = vmatprep.subr.bf16.mxu0 %v2720_v45  ;;  %2731 = vmatprep.subr.bf16.mxu1 %v2720_v45  ;;  %v1662_v2 = vadd.f32 %v4400_v15, %v1623_v12  ;;  %v5166_v48 = vld [vmem:[#allocation14_spill] sm:$0xff] }
 0x3bc   : > { %v1624_v20 = vadd.f32 %v1592_v63, %v1427_v7 }
 0x3be   : > { %v1663_v41 = vadd.f32 %v4400_v15, %v1624_v20 }
 0x3c0   : > { %v2722_v51 = vpack.c.bf16 %v1663_v41, %v1662_v2 }
 0x3c2   : > { %2723 = vmatpush3.bf16.msra.mxu0 %v2722_v51  ;;  %2739 = vmatpush3.bf16.msra.mxu1 %v2722_v51 }
 0x3c5   : > { %2263 = vmatmul.mubr.f32.vlgmr.msra.gmra.mrb[0].mxu0 %v2957_v23  ;;  %2303 = vmatmul.mubr.f32.vlgmr.msra.gmra.mrb[0].mxu1 %v2958_v4 }
 0x3c6   : > { %2267 = vmatprep.mubr.f32.mxu0 %v5163_v52  ;;  %2307 = vmatprep.mubr.f32.mxu1 %v5164_v16 }
 0x3c9   : > { %2268 = vmatmul.mubr.f32.gmra.mrb[2].mxu0 %v5165_v61  ;;  %2308 = vmatmul.mubr.f32.gmra.mrb[2].mxu1 %v5166_v48 }
 0x3ca   : > { %2272 = vmatprep.mubr.f32.mxu0 %v4296_v26  ;;  %2312 = vmatprep.mubr.f32.mxu1 %v4403_v17 }
 0x3cd   : > { %2273 = vmatmul.mubr.f32.gmra.mrb[4].mxu0 %v4299_v9  ;;  %2313 = vmatmul.mubr.f32.gmra.mrb[4].mxu1 %v4406_v39  ;;  %v5167_v9 = vld [vmem:[#allocation29_spill] sm:$0xff] }
 0x3ce   : > { %2317 = vmatprep.mubr.f32.mxu1 %v4583_v57 }
 0x3d1   : > { %2318 = vmatmul.mubr.f32.gmra.mrb[6].mxu1 %v4586_v32  ;;  %v5168_v32 = vld [vmem:[#allocation30_spill] sm:$0xff] }
 0x3ea   : > { %v2081_v15 = vpop.xlane.xlu1 %2080 }
 0x3eb   : > { %2918 = vrcp.f32 %v2081_v15 }
 0x3ee   : > { %v2084_v56 = vpop.xlane.xlu1 %2083 }
 0x3ef   : > { %2920 = vrcp.f32 %v2084_v56 }
 0x3f2   : > { %v2108_v50 = vpop.xlane.xlu1 %2107 }
 0x3f3   : > { %2922 = vrcp.f32 %v2108_v50 }
 0x3f5   : > { %v2919_v26 = vpop.eup %2918 }
 0x3f6   : > { %v2111_v17 = vpop.xlane.xlu1 %2110  ;;  %v2141_v43 = vmul.f32 %v2919_v26, %v4323_v62  ;;  %v2140_v54 = vmul.f32 %v2919_v26, %v5167_v9 }
 0x3f7   : > { %2924 = vrcp.f32 %v2111_v17 }
 0x3f8   : > { %2173 = vst [vmem:[%s4126_s29 + $0x38] sm:$0xff] %v2141_v43  ;;  %2277 = vmatprep.mubr.f32.mxu0 %v2141_v43  ;;  %2172 = vst [vmem:[%s4126_s29 + $0x30] sm:$0xff] %v2140_v54 }
 0x3f9   : > { %v2921_v39 = vpop.eup %2920  ;;  %2278 = vmatmul.mubr.f32.gmra.mrb[6].mxu0 %v2140_v54 }
 0x3fa   : > { %v2114_v57 = vpop.xlane.xlu1 %2113  ;;  %v2143_v27 = vmul.f32 %v2921_v39, %v5168_v32  ;;  %v2142_v18 = vmul.f32 %v2921_v39, %v5169_v25 }
 0x3fb   : > { %2926 = vrcp.f32 %v2114_v57 }
 0x3fc   : > { %2175 = vst [vmem:[%s4126_s29 + $0x48] sm:$0xff] %v2143_v27  ;;  %2282 = vmatprep.mubr.f32.mxu0 %v2143_v27  ;;  %2174 = vst [vmem:[%s4126_s29 + $0x40] sm:$0xff] %v2142_v18 }
 0x3fd   : > { %v2923_v62 = vpop.eup %2922  ;;  %2283 = vmatmul.mubr.f32.gmra.mrb[8].mxu0 %v2142_v18 }
 0x3fe   : > { %2287 = vmatprep.mubr.f32.mxu0 %v4608_v31  ;;  %v2117_v28 = vpop.xlane.xlu1 %2116  ;;  %v2159_v53 = vmul.f32 %v2923_v62, %v5170_v10  ;;  %v2158_v8 = vmul.f32 %v2923_v62, %v5171_v29 }
 0x3ff   : > { %2928 = vrcp.f32 %v2117_v28 }
 0x400   : > { %2191 = vst [vmem:[%s4126_s29 + $0xc8] sm:$0xff] %v2159_v53  ;;  %2322 = vmatprep.mubr.f32.mxu1 %v2159_v53  ;;  %2190 = vst [vmem:[%s4126_s29 + $0xc0] sm:$0xff] %v2158_v8 }
 0x401   : > { %v2925_v42 = vpop.eup %2924  ;;  %2288 = vmatmul.mubr.f32.gmra.mrb[10].mxu0 %v4611_v24  ;;  %2323 = vmatmul.mubr.f32.gmra.mrb[8].mxu1 %v2158_v8  ;;  %v5174_v24 = vld [vmem:[#allocation79_spill] sm:$0xff] }
 0x402   : > { %2292 = vmatprep.mubr.f32.mxu0 %v4631_v22  ;;  %v2161_v31 = vmul.f32 %v2925_v42, %v5172_v14  ;;  %v2160_v6 = vmul.f32 %v2925_v42, %v5173_v58  ;;  %v5175_v22 = vld [vmem:[#allocation25_spill] sm:$0xff] }
 0x404   : > { %2193 = vst [vmem:[%s4126_s29 + $0xd8] sm:$0xff] %v2161_v31  ;;  %2327 = vmatprep.mubr.f32.mxu1 %v2161_v31  ;;  %2192 = vst [vmem:[%s4126_s29 + $0xd0] sm:$0xff] %v2160_v6 }
 0x405   : > { %v2927_v19 = vpop.eup %2926  ;;  %2293 = vmatmul.mubr.f32.gmra.mrb[12].mxu0 %v4634_v38  ;;  %2328 = vmatmul.mubr.f32.gmra.mrb[10].mxu1 %v2160_v6 }
 0x406   : > { %2297 = vmatprep.mubr.f32.mxu0 %v4648_v13  ;;  %v2163_v44 = vmul.f32 %v2927_v19, %v5174_v24  ;;  %v2162_v55 = vmul.f32 %v2927_v19, %v5175_v22 }
 0x408   : > { %2195 = vst [vmem:[%s4126_s29 + $0xe8] sm:$0xff] %v2163_v44  ;;  %2332 = vmatprep.mubr.f32.mxu1 %v2163_v44  ;;  %2194 = vst [vmem:[%s4126_s29 + $0xe0] sm:$0xff] %v2162_v55 }
 0x409   : > { %v2929_v3 = vpop.eup %2928  ;;  %2298 = vmatmul.mubr.f32.gmra.mrb[14].mxu0 %v4651_v59  ;;  %2333 = vmatmul.mubr.f32.gmra.mrb[12].mxu1 %v2162_v55 }
 0x40a   : > { %v2165_v38 = vmul.f32 %v2929_v3, %v4423_v30  ;;  %v2164_v5 = vmul.f32 %v2929_v3, %v4411_v34 }
 0x40c   : > { %2197 = vst [vmem:[%s4126_s29 + $0xf8] sm:$0xff] %v2165_v38  ;;  %2337 = vmatprep.mubr.f32.mxu1 %v2165_v38  ;;  %2196 = vst [vmem:[%s4126_s29 + $0xf0] sm:$0xff] %v2164_v5  ;;  %s2981_s29 = scalar_lea.vmem %s2980_s26, 8192 }
 0x40d   : > { %2338 = vmatmul.mubr.f32.gmra.mrb[14].mxu1 %v2164_v5  ;;  %p2983_p5 = scmp.lt.s32.totalorder %s2981_s29, %s2975_s3 }
 0x40f   : > { %p2984_p6 = por %p2983_p5, %p2982_p4 }
 0x411   : > { %p2985_p7 = pnand %p2984_p6, %p2978_p2 }
 0x413   : > { %2988 = shalt.err (!%p2985_p7)
}
 0x414   : > { %s2989_s1 = scalar_lea.hbm %s4733_s0, 4096  ;;  %s2993_s18 = scalar_lea.hbm %s4871_s11, 16384 }
 0x415   : > { %p2990_p9 = scmp.ne.s32.totalorder %s4733_s0, %s2989_s1  ;;  %p2994_p12 = scmp.lt.u32.totalorder %s4733_s0, %s4871_s11 }
 0x416   : > { %p2995_p13 = scmp.lt.u32.totalorder %s2993_s18, %s2989_s1  ;;  %p2997_p1 = scmp.lt.u32.totalorder %s2989_s1, %s4733_s0 }
 0x417   : > { %p2991_p10 = pnand %p2990_p9, %p3201_p3 }
 0x418   : > { %p2996_p0 = por %p2995_p13, %p2994_p12 }
 0x419   : > { %p2992_p11 = pneg %p2991_p10 }
 0x41a   : > { %p2998_p2 = por %p2997_p1, %p2996_p0 }
 0x41c   : > { %p2999_p4 = pnand %p2998_p2, %p2992_p11 }
 0x41e   : > { %3002 = shalt.err (!%p2999_p4)
}
 0x41f   : > { %s3079_s3 = smov 256   ;;  %s3080_s17 = smov 16   ;;  %v4761_v34 = vpop.permute.xlu0 %2350  ;;  %vm2385_vm1 = vcmask 31744   ;;  %v2959_v49 = vld [vmem:[%s3245_s5] sm:$0xff]  ;;  %v2961_v23 = vld [vmem:[%s3245_s5 + $0x8] sm:$0xff]  ;;  %v2963_v17 = vld [vmem:[%s3245_s5 + $0x10] sm:$0xff] }
 0x420   : > { %2740 = dma.vmem_to_hbm [thread:$0]  (%p3201_p3), %s4728_s20, 4096, %s4733_s0, %s4737_s2, %s3079_s3, %s3079_s3, %s3080_s17  }
 0x421   : > { %s5177_s4 = sshll.u32 %s3234_s13, 3  ;;  %v2960_v1 = vld [vmem:[%s3245_s5 + $0x40] sm:$0xff]  ;;  %v2962_v52 = vld [vmem:[%s3245_s5 + $0x48] sm:$0xff]  ;;  %v2964_v9 = vld [vmem:[%s3245_s5 + $0x50] sm:$0xff] }
 0x422   : > { %s4770_s0 = scalar_lea.vmem %s4870_s10, %s5177_s4  ;;  %v2965_v32 = vld [vmem:[%s3245_s5 + $0x58] sm:$0xff]  ;;  %v2967_v24 = vld [vmem:[%s3245_s5 + $0x20] sm:$0xff] }
 0x423   : > { %v2966_v29 = vld [vmem:[%s3245_s5 + $0x18] sm:$0xff] }
 0x498   : > { %v2644_v30 = vpop.f32.mrb[0].mxu0  ;;  %v2668_v13 = vpop.f32.mrb[0].mxu1 }
 0x499   : > { %v2645_v59 = vpop.f32.mrb[1].mxu0  ;;  %v2669_v0 = vpop.f32.mrb[1].mxu1 }
 0x49a   : > { %v2646_v37 = vadd.f32 %v2645_v59, %v2644_v30  ;;  %v2670_v33 = vadd.f32 %v2669_v0, %v2668_v13  ;;  %v2968_v0 = vld [vmem:[%s3245_s5 + $0x28] sm:$0xff] }
 0x49c   : > { %v2353_v11 = vmul.f32 %v2646_v37, %v4761_v34  ;;  %v2361_v36 = vmul.f32 %v2670_v33, %v4761_v34  ;;  %v2647_v60 = vpop.f32.mrb[2].mxu0  ;;  %v2671_v46 = vpop.f32.mrb[2].mxu1  ;;  %v2969_v33 = vld [vmem:[%s3245_s5 + $0x60] sm:$0xff] }
 0x49d   : > { %v2648_v35 = vpop.f32.mrb[3].mxu0  ;;  %v2672_v21 = vpop.f32.mrb[3].mxu1 }
 0x49e   : > { %v2369_v47 = vadd.f32 %v2959_v49, %v2353_v11  ;;  %v2377_v45 = vadd.f32 %v2960_v1, %v2361_v36  ;;  %v2649_v40 = vadd.f32 %v2648_v35, %v2647_v60  ;;  %v2673_v7 = vadd.f32 %v2672_v21, %v2671_v46 }
 0x4a0   : > { %2386 = vst.msk [vmem:[%s4770_s0] sm:$0xff] %vm2385_vm1, %v2369_v47  ;;  %2394 = vst.msk [vmem:[%s4770_s0 + $0x40] sm:$0xff] %vm2385_vm1, %v2377_v45  ;;  %v2354_v12 = vmul.f32 %v2649_v40, %v4761_v34  ;;  %v2362_v63 = vmul.f32 %v2673_v7, %v4761_v34  ;;  %v2650_v20 = vpop.f32.mrb[4].mxu0  ;;  %v2674_v2 = vpop.f32.mrb[4].mxu1  ;;  %v2970_v45 = vld [vmem:[%s3245_s5 + $0x30] sm:$0xff]  ;;  %v2971_v7 = vld [vmem:[%s3245_s5 + $0x68] sm:$0xff] }
 0x4a1   : > { %v2651_v41 = vpop.f32.mrb[5].mxu0  ;;  %v2675_v51 = vpop.f32.mrb[5].mxu1 }
 0x4a2   : > { %v2370_v4 = vadd.f32 %v2961_v23, %v2354_v12  ;;  %v2378_v16 = vadd.f32 %v2962_v52, %v2362_v63  ;;  %v2652_v61 = vadd.f32 %v2651_v41, %v2650_v20  ;;  %v2676_v48 = vadd.f32 %v2675_v51, %v2674_v2 }
 0x4a4   : > { %2387 = vst.msk [vmem:[%s4770_s0 + $0x8] sm:$0xff] %vm2385_vm1, %v2370_v4  ;;  %2395 = vst.msk [vmem:[%s4770_s0 + $0x48] sm:$0xff] %vm2385_vm1, %v2378_v16  ;;  %v2355_v15 = vmul.f32 %v2652_v61, %v4761_v34  ;;  %v2363_v56 = vmul.f32 %v2676_v48, %v4761_v34  ;;  %v2677_v50 = vpop.f32.mrb[6].mxu1  ;;  %v2972_v4 = vld [vmem:[%s3245_s5 + $0x38] sm:$0xff]  ;;  %v2973_v16 = vld [vmem:[%s3245_s5 + $0x70] sm:$0xff] }
 0x4a5   : > { %v2678_v26 = vpop.f32.mrb[7].mxu1 }
 0x4a6   : > { %v2371_v43 = vadd.f32 %v2963_v17, %v2355_v15  ;;  %v2379_v54 = vadd.f32 %v2964_v9, %v2363_v56  ;;  %v2679_v39 = vadd.f32 %v2678_v26, %v2677_v50  ;;  %v2974_v56 = vld [vmem:[%s3245_s5 + $0x78] sm:$0xff] }
 0x4a8   : > { %2388 = vst.msk [vmem:[%s4770_s0 + $0x10] sm:$0xff] %vm2385_vm1, %v2371_v43  ;;  %2396 = vst.msk [vmem:[%s4770_s0 + $0x50] sm:$0xff] %vm2385_vm1, %v2379_v54  ;;  %v2364_v57 = vmul.f32 %v2679_v39, %v4761_v34 }
 0x4aa   : > { %v2380_v27 = vadd.f32 %v2965_v32, %v2364_v57 }
 0x4ac   : > { %2397 = vst.msk [vmem:[%s4770_s0 + $0x58] sm:$0xff] %vm2385_vm1, %v2380_v27 }
 0x4cc   : > { %v2653_v25 = vpop.f32.mrb[6].mxu0 }
 0x4cd   : > { %v2654_v18 = vpop.f32.mrb[7].mxu0 }
 0x4ce   : > { %v2655_v62 = vadd.f32 %v2654_v18, %v2653_v25 }
 0x4d0   : > { %v2356_v28 = vmul.f32 %v2655_v62, %v4761_v34  ;;  %v2656_v10 = vpop.f32.mrb[8].mxu0 }
 0x4d1   : > { %v2657_v53 = vpop.f32.mrb[9].mxu0 }
 0x4d2   : > { %v2372_v8 = vadd.f32 %v2966_v29, %v2356_v28  ;;  %v2658_v42 = vadd.f32 %v2657_v53, %v2656_v10 }
 0x4d4   : > { %2389 = vst.msk [vmem:[%s4770_s0 + $0x18] sm:$0xff] %vm2385_vm1, %v2372_v8  ;;  %v2357_v14 = vmul.f32 %v2658_v42, %v4761_v34  ;;  %v2659_v31 = vpop.f32.mrb[10].mxu0  ;;  %v2680_v58 = vpop.f32.mrb[8].mxu1 }
 0x4d5   : > { %v2660_v6 = vpop.f32.mrb[11].mxu0  ;;  %v2681_v19 = vpop.f32.mrb[9].mxu1 }
 0x4d6   : > { %v2373_v44 = vadd.f32 %v2967_v24, %v2357_v14  ;;  %v2661_v22 = vadd.f32 %v2660_v6, %v2659_v31  ;;  %v2682_v55 = vadd.f32 %v2681_v19, %v2680_v58 }
 0x4d8   : > { %2390 = vst.msk [vmem:[%s4770_s0 + $0x20] sm:$0xff] %vm2385_vm1, %v2373_v44  ;;  %v2358_v3 = vmul.f32 %v2661_v22, %v4761_v34  ;;  %v2365_v38 = vmul.f32 %v2682_v55, %v4761_v34  ;;  %v2662_v5 = vpop.f32.mrb[12].mxu0  ;;  %v2683_v30 = vpop.f32.mrb[10].mxu1 }
 0x4d9   : > { %v2663_v13 = vpop.f32.mrb[13].mxu0  ;;  %v2684_v59 = vpop.f32.mrb[11].mxu1 }
 0x4da   : > { %v2374_v37 = vadd.f32 %v2968_v0, %v2358_v3  ;;  %v2381_v11 = vadd.f32 %v2969_v33, %v2365_v38  ;;  %v2664_v36 = vadd.f32 %v2663_v13, %v2662_v5  ;;  %v2685_v60 = vadd.f32 %v2684_v59, %v2683_v30 }
 0x4dc   : > { %2391 = vst.msk [vmem:[%s4770_s0 + $0x28] sm:$0xff] %vm2385_vm1, %v2374_v37  ;;  %2398 = vst.msk [vmem:[%s4770_s0 + $0x60] sm:$0xff] %vm2385_vm1, %v2381_v11  ;;  %v2359_v46 = vmul.f32 %v2664_v36, %v4761_v34  ;;  %v2366_v35 = vmul.f32 %v2685_v60, %v4761_v34  ;;  %v2665_v21 = vpop.f32.mrb[14].mxu0  ;;  %v2686_v49 = vpop.f32.mrb[12].mxu1 }
 0x4dd   : > { %v2666_v47 = vpop.f32.mrb[15].mxu0  ;;  %v2687_v1 = vpop.f32.mrb[13].mxu1 }
 0x4de   : > { %v2375_v40 = vadd.f32 %v2970_v45, %v2359_v46  ;;  %v2382_v12 = vadd.f32 %v2971_v7, %v2366_v35  ;;  %v2667_v63 = vadd.f32 %v2666_v47, %v2665_v21  ;;  %v2688_v20 = vadd.f32 %v2687_v1, %v2686_v49 }
 0x4e0   : > { %2392 = vst.msk [vmem:[%s4770_s0 + $0x30] sm:$0xff] %vm2385_vm1, %v2375_v40  ;;  %2399 = vst.msk [vmem:[%s4770_s0 + $0x68] sm:$0xff] %vm2385_vm1, %v2382_v12  ;;  %v2360_v2 = vmul.f32 %v2667_v63, %v4761_v34  ;;  %v2367_v41 = vmul.f32 %v2688_v20, %v4761_v34  ;;  %v2689_v51 = vpop.f32.mrb[14].mxu1 }
 0x4e1   : > { %v2690_v23 = vpop.f32.mrb[15].mxu1 }
 0x4e2   : > { %v2376_v52 = vadd.f32 %v2972_v4, %v2360_v2  ;;  %v2383_v61 = vadd.f32 %v2973_v16, %v2367_v41  ;;  %v2691_v48 = vadd.f32 %v2690_v23, %v2689_v51 }
 0x4e4   : > { %2393 = vst.msk [vmem:[%s4770_s0 + $0x38] sm:$0xff] %vm2385_vm1, %v2376_v52  ;;  %2400 = vst.msk [vmem:[%s4770_s0 + $0x70] sm:$0xff] %vm2385_vm1, %v2383_v61  ;;  %v2368_v15 = vmul.f32 %v2691_v48, %v4761_v34 }
 0x4e6   : > { %v2384_v50 = vadd.f32 %v2974_v56, %v2368_v15 }
 0x4e8   : > { %2401 = vst.msk [vmem:[%s4770_s0 + $0x78] sm:$0xff] %vm2385_vm1, %v2384_v50 }
 0x4e9 PF: > { %p2746_p3 = scmp.ge.s32.totalorder %s3069_s9, 2  ;;  %s2459_s2 = sand.u32 1, %s3041_s23  }
 0x4ea   : > { %s2460_s13 = scalar_lea.sflag [#allocation6], %s2459_s2 }
 0x4eb   : > { %p2743_p5 = pnand %p2746_p3, %p3210_p8 }
 0x4ed   : > { %3036 = dma.done.wait (!%p2743_p5), %s2460_s13, 4096  }
 0x4ee   : > { %3038 = vsyncadd (!%p2743_p5), %s2460_s13, 4294963200  ;;  %s31_s9 = sadd.s32 1, %s3069_s9   ;;  %s5178_s23 = smov %s3045_s24 }
 0x4ef   : > { %p28_p6 = scmp.ge.s32.totalorder %s31_s9, 6   ;;  %s5179_s24 = smov %s3049_s25 }
 0x4f0   : > { %s5180_s25 = smov %s3219_s19  ;;  %s5181_s4 = smov %s3061_s6 }
 0x4f1   : > { %s5182_s26 = smov %s3065_s27  ;;  %s5183_s6 = smov %s5186_s30 }
 0x4f2   : > { %s5184_s27 = smov %s5190_s12  ;;  %30 = sbr.rel (!%p28_p6) target bundleno = 11 (0xb), region = 113 }
 0x4f9   :  { %2465 = vsyncpa [#allocation6], 1 }
 0x4fa   :  { %2467 = vsyncpa [#allocation6 + $0x1], 1 }

</bundles_post_ra>
